<compile_context>
chip_gen: v5e
topology: v5e:2x2
jax: 0.10.0
libtpu: 0.0.40
codegen_flags: <defaults>
</compile_context>

<pallas_src>
import functools

import jax
import jax.numpy as jnp
from jax.experimental import pallas as pl
from jax.experimental.pallas import tpu as pltpu

K_HOPS = 2      # DGL TAGConv default k
F_PAD = 128     # pad every feature dim (in/hidden/classes) to a full lane width
N_ALIGN = 128   # pad node count so adjacency matmuls are lane-dense & full-depth


def tagcn_fused_kernel(adj_ref, x_ref, w_ref, b_ref, o_ref, *, n_layers, k):
    """All TAGConv layers fused in one kernel invocation.

    adj:(Np,Np) bf16   x:(Np,F_PAD) bf16   w:(L,(k+1)*F_PAD,F_PAD) bf16
    b:(L,1,F_PAD) f32  o:(Np,F_PAD) f32
    """
    adj = adj_ref[...]                        # bf16 adjacency, loaded once
    h = x_ref[...]                            # bf16 (Np, F_PAD), padded cols are 0
    for layer in range(n_layers):             # static unrolled layer loop
        w_l = w_ref[layer]                    # ((k+1)*F_PAD, F_PAD) bf16
        # Hop-0 projection; per-hop accumulation (no (N, 3F) concat buffer).
        acc = jnp.dot(h, w_l[0:F_PAD, :], preferred_element_type=jnp.float32)
        t = h
        for hop in range(1, k + 1):
            # One hop of propagation: bf16 MXU inputs, f32 accumulation.
            t = jnp.dot(adj, t, preferred_element_type=jnp.float32
                        ).astype(jnp.bfloat16)
            acc = acc + jnp.dot(t, w_l[hop * F_PAD:(hop + 1) * F_PAD, :],
                                preferred_element_type=jnp.float32)
        acc = acc + b_ref[layer]              # f32 VPU epilogue: bias
        if layer != n_layers - 1:
            acc = jnp.maximum(acc, 0.0)       # ReLU (not on last layer)
            h = acc.astype(jnp.bfloat16)      # bf16 feed into next layer's MXU
        else:
            h = acc                           # keep last layer result in f32
    o_ref[...] = h.astype(o_ref.dtype)


def tagcn_pallas(adj_bf, x_bf, w_bf, b_f32):
    """Single fused pallas_call; everything VMEM-resident at these sizes."""
    n, fpad = x_bf.shape
    num_layers = w_bf.shape[0]
    kernel = functools.partial(tagcn_fused_kernel, n_layers=num_layers, k=K_HOPS)
    vmem = lambda: pl.BlockSpec(memory_space=pltpu.MemorySpace.VMEM)

    # Size the scoped-VMEM limit from the actual resident footprint (+ headroom),
    # capped at 64 MiB so the same budget also fits v7x's physical VMEM.
    resident = sum(int(a.size) * a.dtype.itemsize for a in (adj_bf, x_bf, w_bf, b_f32))
    resident += n * fpad * 4                                   # f32 output
    vmem_limit = int(min(max(4 * resident, 16 << 20), 64 << 20))

    return pl.pallas_call(
        kernel,
        out_shape=jax.ShapeDtypeStruct((n, fpad), jnp.float32),
        in_specs=[vmem(), vmem(), vmem(), vmem()],
        out_specs=vmem(),
        compiler_params=pltpu.CompilerParams(vmem_limit_bytes=vmem_limit),
    )(adj_bf, x_bf, w_bf, b_f32)


def init_tagcn_params(key, in_feats, n_hidden, n_classes, n_layers):
    """Deterministic synthetic params.  Layer i: W:(Fin*(K+1), Fout), b:(1,Fout)."""
    dims = ([(in_feats, n_hidden)]
            + [(n_hidden, n_hidden)] * (n_layers - 1)
            + [(n_hidden, n_classes)])
    params = []
    for fi, fo in dims:
        key, k1, k2 = jax.random.split(key, 3)
        w = 0.1 * jax.random.normal(k1, (fi * (K_HOPS + 1), fo), jnp.float32)
        b = 0.1 * jax.random.normal(k2, (1, fo), jnp.float32)
        params.append((w, b))
    return params


def pack_params(params, f_pad):
    """Zero-pad every layer's W/b to ((K+1)*f_pad, f_pad)/(1, f_pad), stack, cast W->bf16.

    Done ONCE on the host (hoisted out of the forward path)."""
    num_layers = len(params)
    w_all = jnp.zeros((num_layers, (K_HOPS + 1) * f_pad, f_pad), jnp.float32)
    b_all = jnp.zeros((num_layers, 1, f_pad), jnp.float32)
    for l, (w, b) in enumerate(params):
        fo = w.shape[1]
        fi = w.shape[0] // (K_HOPS + 1)
        for hop in range(K_HOPS + 1):
            w_all = w_all.at[l, hop * f_pad:hop * f_pad + fi, :fo].set(
                w[hop * fi:(hop + 1) * fi, :])
        b_all = b_all.at[l, 0, :fo].set(b[0])
    return w_all.astype(jnp.bfloat16), b_all          # bias stays f32 (VPU add)


def prepare_graph(adj, features):
    """Pad N up to a multiple of 128 and features to F_PAD lanes; cast to bf16.

    Done ONCE on the host."""
    n, fin = features.shape
    n_pad = ((n + N_ALIGN - 1) // N_ALIGN) * N_ALIGN
    adj_pad = jnp.zeros((n_pad, n_pad), jnp.float32).at[:n, :n].set(adj)
    x_pad = jnp.zeros((n_pad, F_PAD), jnp.float32).at[:n, :fin].set(features)
    return adj_pad.astype(jnp.bfloat16), x_pad.astype(jnp.bfloat16)


def tagcn_reference(adj, features, params):
    """Pure-JAX f32 reference (unpadded, same math) for the correctness check."""
    h = features
    for i, (w, b) in enumerate(params):
        hs, t = [h], h
        for _ in range(K_HOPS):
            t = adj @ t
            hs.append(t)
        h = jnp.concatenate(hs, axis=-1) @ w + b
        if i != len(params) - 1:
            h = jnp.maximum(h, 0.0)
    return h


if __name__ == "__main__":
    # Small, deterministic graph + features.
    N, IN_FEATS, N_HIDDEN, N_CLASSES, N_LAYERS = 64, 16, 32, 8, 2

    key = jax.random.PRNGKey(0)
    k_adj, k_feat, k_param = jax.random.split(key, 3)

    # Random symmetric (undirected) adjacency, no self loops.
    upper = (jax.random.uniform(k_adj, (N, N)) < 0.15).astype(jnp.float32)
    upper = jnp.triu(upper, k=1)
    A = upper + upper.T
    # DGL TAGConv normalization: norm = in_degree.clamp(min=1)^{-1/2}
    deg = jnp.maximum(jnp.sum(A, axis=0), 1.0)
    norm = deg ** -0.5
    A_hat = norm[:, None] * A * norm[None, :]   # D^{-1/2} A D^{-1/2}

    features = jax.random.normal(k_feat, (N, IN_FEATS), jnp.float32)
    params = init_tagcn_params(k_param, IN_FEATS, N_HIDDEN, N_CLASSES, N_LAYERS)

    # Host-side prep (padding + packing + bf16 cast) hoisted out of the forward.
    adj_bf, x_bf = prepare_graph(A_hat, features)
    w_bf, b_f32 = pack_params(params, F_PAD)

    # TODO(synk): nn.Dropout between layers is identity at inference; skipped.
    fwd = jax.jit(tagcn_pallas)
    out_pad = jax.block_until_ready(fwd(adj_bf, x_bf, w_bf, b_f32))
    out = out_pad[:N, :N_CLASSES]

    ref = tagcn_reference(A_hat, features, params)
    assert out.shape == (N, N_CLASSES)
    # bf16 MXU inputs (f32 accumulation) -> looser tolerance than pure-f32 path.
    assert jnp.allclose(out, ref, atol=5e-2, rtol=5e-2), "mismatch vs reference"

    print("KERNEL_OK")
</pallas_src>

<mosaic_0001>
module attributes {stable_mosaic.version = 11 : i64} {
  func.func @tagcn_fused_kernel(%arg0: memref<128x128xbf16, #tpu.memory_space<vmem>>, %arg1: memref<128x128xbf16, #tpu.memory_space<vmem>>, %arg2: memref<3x384x128xbf16, #tpu.memory_space<vmem>>, %arg3: memref<3x1x128xf32, #tpu.memory_space<vmem>>, %arg4: memref<128x128xf32, #tpu.memory_space<vmem>>) attributes {dimension_semantics = [], scalar_prefetch = 0 : i64, scratch_operands = 0 : i64, tpu.core_type = #tpu.core_type<tc>} {
    %c0 = arith.constant 0 : index
    %c0_0 = arith.constant 0 : index
    %0 = vector.load %arg0[%c0, %c0_0] : memref<128x128xbf16, #tpu.memory_space<vmem>>, vector<128x128xbf16>
    %c0_1 = arith.constant 0 : index
    %c0_2 = arith.constant 0 : index
    %1 = vector.load %arg1[%c0_1, %c0_2] : memref<128x128xbf16, #tpu.memory_space<vmem>>, vector<128x128xbf16>
    %c0_3 = arith.constant 0 : index
    %c0_4 = arith.constant 0 : index
    %c0_5 = arith.constant 0 : index
    %2 = vector.load %arg2[%c0_3, %c0_4, %c0_5] : memref<3x384x128xbf16, #tpu.memory_space<vmem>>, vector<1x384x128xbf16>
    %3 = vector.shape_cast %2 : vector<1x384x128xbf16> to vector<384x128xbf16>
    %4 = vector.extract_strided_slice %3 {offsets = [0, 0], sizes = [128, 128], strides = [1, 1]} : vector<384x128xbf16> to vector<128x128xbf16>
    %cst = arith.constant dense<0.000000e+00> : vector<128x128xf32>
    %5 = tpu.matmul %1, %4, %cst {dimension_numbers = #tpu.dot_dimension_numbers<[1], [0], [0], [1], [0, 0, 1, 1], [], []>} : vector<128x128xbf16>, vector<128x128xbf16>, vector<128x128xf32> -> vector<128x128xf32>
    %cst_6 = arith.constant dense<0.000000e+00> : vector<128x128xf32>
    %6 = tpu.matmul %0, %1, %cst_6 {dimension_numbers = #tpu.dot_dimension_numbers<[1], [0], [0], [1], [0, 0, 1, 1], [], []>} : vector<128x128xbf16>, vector<128x128xbf16>, vector<128x128xf32> -> vector<128x128xf32>
    %7 = arith.truncf %6 : vector<128x128xf32> to vector<128x128xbf16>
    %8 = vector.extract_strided_slice %3 {offsets = [128, 0], sizes = [128, 128], strides = [1, 1]} : vector<384x128xbf16> to vector<128x128xbf16>
    %cst_7 = arith.constant dense<0.000000e+00> : vector<128x128xf32>
    %9 = tpu.matmul %7, %8, %cst_7 {dimension_numbers = #tpu.dot_dimension_numbers<[1], [0], [0], [1], [0, 0, 1, 1], [], []>} : vector<128x128xbf16>, vector<128x128xbf16>, vector<128x128xf32> -> vector<128x128xf32>
    %10 = arith.addf %5, %9 : vector<128x128xf32>
    %cst_8 = arith.constant dense<0.000000e+00> : vector<128x128xf32>
    %11 = tpu.matmul %0, %7, %cst_8 {dimension_numbers = #tpu.dot_dimension_numbers<[1], [0], [0], [1], [0, 0, 1, 1], [], []>} : vector<128x128xbf16>, vector<128x128xbf16>, vector<128x128xf32> -> vector<128x128xf32>
    %12 = arith.truncf %11 : vector<128x128xf32> to vector<128x128xbf16>
    %13 = vector.extract_strided_slice %3 {offsets = [256, 0], sizes = [128, 128], strides = [1, 1]} : vector<384x128xbf16> to vector<128x128xbf16>
    %cst_9 = arith.constant dense<0.000000e+00> : vector<128x128xf32>
    %14 = tpu.matmul %12, %13, %cst_9 {dimension_numbers = #tpu.dot_dimension_numbers<[1], [0], [0], [1], [0, 0, 1, 1], [], []>} : vector<128x128xbf16>, vector<128x128xbf16>, vector<128x128xf32> -> vector<128x128xf32>
    %15 = arith.addf %10, %14 : vector<128x128xf32>
    %c0_10 = arith.constant 0 : index
    %c0_11 = arith.constant 0 : index
    %c0_12 = arith.constant 0 : index
    %16 = vector.load %arg3[%c0_10, %c0_11, %c0_12] : memref<3x1x128xf32, #tpu.memory_space<vmem>>, vector<1x1x128xf32>
    %17 = vector.shape_cast %16 : vector<1x1x128xf32> to vector<1x128xf32>
    %18 = vector.broadcast %17 : vector<1x128xf32> to vector<128x128xf32>
    %19 = arith.addf %15, %18 : vector<128x128xf32>
    %cst_13 = arith.constant 0.000000e+00 : f32
    %20 = vector.broadcast %cst_13 : f32 to vector<128x128xf32>
    %21 = arith.maximumf %19, %20 : vector<128x128xf32>
    %22 = arith.truncf %21 : vector<128x128xf32> to vector<128x128xbf16>
    %c1 = arith.constant 1 : index
    %c0_14 = arith.constant 0 : index
    %c0_15 = arith.constant 0 : index
    %23 = vector.load %arg2[%c1, %c0_14, %c0_15] : memref<3x384x128xbf16, #tpu.memory_space<vmem>>, vector<1x384x128xbf16>
    %24 = vector.shape_cast %23 : vector<1x384x128xbf16> to vector<384x128xbf16>
    %25 = vector.extract_strided_slice %24 {offsets = [0, 0], sizes = [128, 128], strides = [1, 1]} : vector<384x128xbf16> to vector<128x128xbf16>
    %cst_16 = arith.constant dense<0.000000e+00> : vector<128x128xf32>
    %26 = tpu.matmul %22, %25, %cst_16 {dimension_numbers = #tpu.dot_dimension_numbers<[1], [0], [0], [1], [0, 0, 1, 1], [], []>} : vector<128x128xbf16>, vector<128x128xbf16>, vector<128x128xf32> -> vector<128x128xf32>
    %cst_17 = arith.constant dense<0.000000e+00> : vector<128x128xf32>
    %27 = tpu.matmul %0, %22, %cst_17 {dimension_numbers = #tpu.dot_dimension_numbers<[1], [0], [0], [1], [0, 0, 1, 1], [], []>} : vector<128x128xbf16>, vector<128x128xbf16>, vector<128x128xf32> -> vector<128x128xf32>
    %28 = arith.truncf %27 : vector<128x128xf32> to vector<128x128xbf16>
    %29 = vector.extract_strided_slice %24 {offsets = [128, 0], sizes = [128, 128], strides = [1, 1]} : vector<384x128xbf16> to vector<128x128xbf16>
    %cst_18 = arith.constant dense<0.000000e+00> : vector<128x128xf32>
    %30 = tpu.matmul %28, %29, %cst_18 {dimension_numbers = #tpu.dot_dimension_numbers<[1], [0], [0], [1], [0, 0, 1, 1], [], []>} : vector<128x128xbf16>, vector<128x128xbf16>, vector<128x128xf32> -> vector<128x128xf32>
    %31 = arith.addf %26, %30 : vector<128x128xf32>
    %cst_19 = arith.constant dense<0.000000e+00> : vector<128x128xf32>
    %32 = tpu.matmul %0, %28, %cst_19 {dimension_numbers = #tpu.dot_dimension_numbers<[1], [0], [0], [1], [0, 0, 1, 1], [], []>} : vector<128x128xbf16>, vector<128x128xbf16>, vector<128x128xf32> -> vector<128x128xf32>
    %33 = arith.truncf %32 : vector<128x128xf32> to vector<128x128xbf16>
    %34 = vector.extract_strided_slice %24 {offsets = [256, 0], sizes = [128, 128], strides = [1, 1]} : vector<384x128xbf16> to vector<128x128xbf16>
    %cst_20 = arith.constant dense<0.000000e+00> : vector<128x128xf32>
    %35 = tpu.matmul %33, %34, %cst_20 {dimension_numbers = #tpu.dot_dimension_numbers<[1], [0], [0], [1], [0, 0, 1, 1], [], []>} : vector<128x128xbf16>, vector<128x128xbf16>, vector<128x128xf32> -> vector<128x128xf32>
    %36 = arith.addf %31, %35 : vector<128x128xf32>
    %c1_21 = arith.constant 1 : index
    %c0_22 = arith.constant 0 : index
    %c0_23 = arith.constant 0 : index
    %37 = vector.load %arg3[%c1_21, %c0_22, %c0_23] : memref<3x1x128xf32, #tpu.memory_space<vmem>>, vector<1x1x128xf32>
    %38 = vector.shape_cast %37 : vector<1x1x128xf32> to vector<1x128xf32>
    %39 = vector.broadcast %38 : vector<1x128xf32> to vector<128x128xf32>
    %40 = arith.addf %36, %39 : vector<128x128xf32>
    %cst_24 = arith.constant 0.000000e+00 : f32
    %41 = vector.broadcast %cst_24 : f32 to vector<128x128xf32>
    %42 = arith.maximumf %40, %41 : vector<128x128xf32>
    %43 = arith.truncf %42 : vector<128x128xf32> to vector<128x128xbf16>
    %c2 = arith.constant 2 : index
    %c0_25 = arith.constant 0 : index
    %c0_26 = arith.constant 0 : index
    %44 = vector.load %arg2[%c2, %c0_25, %c0_26] : memref<3x384x128xbf16, #tpu.memory_space<vmem>>, vector<1x384x128xbf16>
    %45 = vector.shape_cast %44 : vector<1x384x128xbf16> to vector<384x128xbf16>
    %46 = vector.extract_strided_slice %45 {offsets = [0, 0], sizes = [128, 128], strides = [1, 1]} : vector<384x128xbf16> to vector<128x128xbf16>
    %cst_27 = arith.constant dense<0.000000e+00> : vector<128x128xf32>
    %47 = tpu.matmul %43, %46, %cst_27 {dimension_numbers = #tpu.dot_dimension_numbers<[1], [0], [0], [1], [0, 0, 1, 1], [], []>} : vector<128x128xbf16>, vector<128x128xbf16>, vector<128x128xf32> -> vector<128x128xf32>
    %cst_28 = arith.constant dense<0.000000e+00> : vector<128x128xf32>
    %48 = tpu.matmul %0, %43, %cst_28 {dimension_numbers = #tpu.dot_dimension_numbers<[1], [0], [0], [1], [0, 0, 1, 1], [], []>} : vector<128x128xbf16>, vector<128x128xbf16>, vector<128x128xf32> -> vector<128x128xf32>
    %49 = arith.truncf %48 : vector<128x128xf32> to vector<128x128xbf16>
    %50 = vector.extract_strided_slice %45 {offsets = [128, 0], sizes = [128, 128], strides = [1, 1]} : vector<384x128xbf16> to vector<128x128xbf16>
    %cst_29 = arith.constant dense<0.000000e+00> : vector<128x128xf32>
    %51 = tpu.matmul %49, %50, %cst_29 {dimension_numbers = #tpu.dot_dimension_numbers<[1], [0], [0], [1], [0, 0, 1, 1], [], []>} : vector<128x128xbf16>, vector<128x128xbf16>, vector<128x128xf32> -> vector<128x128xf32>
    %52 = arith.addf %47, %51 : vector<128x128xf32>
    %cst_30 = arith.constant dense<0.000000e+00> : vector<128x128xf32>
    %53 = tpu.matmul %0, %49, %cst_30 {dimension_numbers = #tpu.dot_dimension_numbers<[1], [0], [0], [1], [0, 0, 1, 1], [], []>} : vector<128x128xbf16>, vector<128x128xbf16>, vector<128x128xf32> -> vector<128x128xf32>
    %54 = arith.truncf %53 : vector<128x128xf32> to vector<128x128xbf16>
    %55 = vector.extract_strided_slice %45 {offsets = [256, 0], sizes = [128, 128], strides = [1, 1]} : vector<384x128xbf16> to vector<128x128xbf16>
    %cst_31 = arith.constant dense<0.000000e+00> : vector<128x128xf32>
    %56 = tpu.matmul %54, %55, %cst_31 {dimension_numbers = #tpu.dot_dimension_numbers<[1], [0], [0], [1], [0, 0, 1, 1], [], []>} : vector<128x128xbf16>, vector<128x128xbf16>, vector<128x128xf32> -> vector<128x128xf32>
    %57 = arith.addf %52, %56 : vector<128x128xf32>
    %c2_32 = arith.constant 2 : index
    %c0_33 = arith.constant 0 : index
    %c0_34 = arith.constant 0 : index
    %58 = vector.load %arg3[%c2_32, %c0_33, %c0_34] : memref<3x1x128xf32, #tpu.memory_space<vmem>>, vector<1x1x128xf32>
    %59 = vector.shape_cast %58 : vector<1x1x128xf32> to vector<1x128xf32>
    %60 = vector.broadcast %59 : vector<1x128xf32> to vector<128x128xf32>
    %61 = arith.addf %57, %60 : vector<128x128xf32>
    %c0_35 = arith.constant 0 : index
    %c0_36 = arith.constant 0 : index
    %62 = vector.load %arg4[%c0_35, %c0_36] : memref<128x128xf32, #tpu.memory_space<vmem>>, vector<128x128xf32>
    tpu.vector_store %arg4[%c0_35, %c0_36], %61 {strides = array<i32>} : memref<128x128xf32, #tpu.memory_space<vmem>>, vector<128x128xf32>,
    return
  }
}

</mosaic_0001>

<bundles_post_ra>
// kernel: tagcn_pallas.1
= control target key start
LH: loop header
LB: loop body
LE: loop exit
PB: predicated region body
PF: predicated region fallthrough
CT: control target
= control target key end

     0   :  { %9 = vsyncpa [#allocation3], 0  ;;  %s2631_s0 = inlined_call_operand.hbm [shape: bf16[128,128], index: 0, kind: input, shape index: {}]   ;;  %s2632_s1 = inlined_call_operand.hbm [shape: bf16[128,128], index: 1, kind: input, shape index: {}]   ;;  %s2633_s2 = inlined_call_operand.hbm [shape: bf16[3,384,128], index: 2, kind: input, shape index: {}]   ;;  %s2634_s3 = inlined_call_operand.hbm [shape: f32[3,1,128], index: 3, kind: input, shape index: {}]   ;;  %s2635_s4 = inlined_call_operand.hbm [shape: f32[128,128], index: 4, kind: output, shape index: {}]  }
   0x1   :  { %10 = vsyncpa [#allocation6], 0 }
   0x2   :  { %11 = vsyncpa [#allocation9], 0 }
   0x3   :  { %12 = vsyncpa [#allocation4], 0  ;;  %s30_s17 = sshll.u32 %s2632_s1, 4  ;;  %s2379_s18 = smov [#allocation5]   ;;  %s31_s17 = int_to_ptr.hbm [resolvable:$true] %s30_s17 }
   0x4   :  { %s32_s19 = sshll.u32 %s2379_s18, 4  ;;  %s17_s22 = sshll.u32 %s2631_s0, 4  ;;  %s33_s19 = int_to_ptr.vmem [resolvable:$true] %s32_s19  ;;  %s18_s22 = int_to_ptr.hbm [resolvable:$true] %s17_s22 }
   0x5   :  { %s2380_s23 = smov 64   ;;  %s2381_s24 = smov 4  }
   0x6   :  { %38 = dma.hbm_to_vmem [thread:$0]  %s31_s17, 1024, %s33_s19, [#allocation6], %s2380_s23, %s2380_s23, %s2381_s24  }
   0x7   :  { %s2382_s25 = smov [#allocation2]   ;;  %s43_s29 = sshll.u32 %s2633_s2, 4  ;;  %s44_s29 = int_to_ptr.hbm [resolvable:$true] %s43_s29 }
   0x8   :  { %s19_s26 = sshll.u32 %s2382_s25, 4  ;;  %s56_s5 = sshll.u32 %s2634_s3, 4  ;;  %s20_s26 = int_to_ptr.vmem [resolvable:$true] %s19_s26  ;;  %s57_s5 = int_to_ptr.hbm [resolvable:$true] %s56_s5 }
   0x9   :  { %25 = dma.hbm_to_vmem [thread:$0]  %s18_s22, 1024, %s20_s26, [#allocation3], %s2380_s23, %s2380_s23, %s2381_s24  }
   0xa   :  { %s2383_s6 = smov [#allocation7]   ;;  %s2384_s0 = smov [#allocation8]  }
   0xb   :  { %s45_s7 = sshll.u32 %s2383_s6, 4  ;;  %s58_s8 = sshll.u32 %s2384_s0, 4  ;;  %s46_s7 = int_to_ptr.vmem [resolvable:$true] %s45_s7  ;;  %s59_s8 = int_to_ptr.vmem [resolvable:$true] %s58_s8 }
   0xc   :  { %51 = dma.hbm_to_vmem [thread:$0]  %s44_s29, 9216, %s46_s7, [#allocation6], %s2380_s23, %s2380_s23, %s2381_s24  }
   0xd   :  { %s2385_s9 = smov 16   ;;  %s2386_s10 = smov 1  }
   0xe   :  { %64 = dma.hbm_to_vmem [thread:$0]  %s57_s5, 48, %s59_s8, [#allocation9], %s2385_s9, %s2385_s9, %s2386_s10  }
   0xf   :  { %2371 = dma.done.wait [#allocation3], 1024  }
  0x10   :  { %2372 = vsyncadd [#allocation3], 4294966272 }
  0x11   :  { %2373 = dma.done.wait [#allocation6], 10240  }
  0x12   :  { %2374 = vsyncadd [#allocation6], 4294957056 }
  0x13   :  { %2375 = dma.done.wait [#allocation9], 48  }
  0x14   :  { %2376 = vsyncadd [#allocation9], 4294967248  ;;  %v2427_v0 = vld [vmem:[#allocation5 + $0x38] sm:$0xff]  ;;  %v2430_v1 = vld [vmem:[#allocation5 + $0x30] sm:$0xff]  ;;  %s2387_s2 = smov [#allocation10]   ;;  %s1750_s13 = sshll.u32 %s2635_s4, 4  ;;  %s1751_s13 = int_to_ptr.hbm [resolvable:$true] %s1750_s13 }
  0x15   :  { %2205 = vmatpush.bf16.msra.mxu3 %v2427_v0  ;;  %257 = vmatpush.bf16.msra.mxu0 %v2427_v0  ;;  %v2434_v2 = vld [vmem:[#allocation5 + $0x28] sm:$0xff]  ;;  %v2438_v3 = vld [vmem:[#allocation5 + $0x20] sm:$0xff]  ;;  %v2442_v4 = vld [vmem:[#allocation5 + $0x18] sm:$0xff]  ;;  %s1748_s3 = sshll.u32 %s2387_s2, 4  ;;  %s2388_s14 = smov 128   ;;  %s1749_s3 = int_to_ptr.vmem [resolvable:$true] %s1748_s3 }
  0x16   :  { %v2127_v5 = vld [vmem:[#allocation5 + $0x10] sm:$0xff]  ;;  %v2447_v6 = vld [vmem:[#allocation5 + $0x8] sm:$0xff]  ;;  %v2450_v7 = vld [vmem:[#allocation5] sm:$0xff]  ;;  %s2389_s15 = smov 8  }
  0x17   :  { %v2453_v8 = vld [vmem:[#allocation2 + $0x10] sm:$0xff]  ;;  %v2458_v9 = vld [vmem:[#allocation2] sm:$0xff]  ;;  %v2461_v10 = vld [vmem:[#allocation2 + $0x18] sm:$0xff] }
  0x18   :  { %v2464_v11 = vld [vmem:[#allocation2 + $0x8] sm:$0xff]  ;;  %v2467_v12 = vld [vmem:[#allocation2 + $0x20] sm:$0xff]  ;;  %v2140_v14 = vld [vmem:[#allocation7 + $0x38] sm:$0xff] }
  0x19   :  { %2206 = vmatpush.bf16.msra.mxu3 %v2430_v1  ;;  %258 = vmatpush.bf16.msra.mxu0 %v2430_v1  ;;  %v2470_v13 = vld [vmem:[#allocation2 + $0x28] sm:$0xff]  ;;  %v2148_v15 = vld [vmem:[#allocation7 + $0x78] sm:$0xff]  ;;  %v2139_v16 = vld [vmem:[#allocation7 + $0x30] sm:$0xff] }
  0x1a   :  { %2221 = vmatpush.bf16.msra.mxu2 %v2140_v14  ;;  %2213 = vmatpush.bf16.msra.mxu1 %v2148_v15  ;;  %v2147_v17 = vld [vmem:[#allocation7 + $0x70] sm:$0xff]  ;;  %v2138_v18 = vld [vmem:[#allocation7 + $0x28] sm:$0xff]  ;;  %v2137_v20 = vld [vmem:[#allocation7 + $0x20] sm:$0xff] }
  0x1b   :  { %v2146_v19 = vld [vmem:[#allocation7 + $0x68] sm:$0xff]  ;;  %v2145_v21 = vld [vmem:[#allocation7 + $0x60] sm:$0xff]  ;;  %v2473_v22 = vld [vmem:[#allocation2 + $0x30] sm:$0xff] }
  0x1c   :  { %v2136_v23 = vld [vmem:[#allocation7 + $0x18] sm:$0xff]  ;;  %v2135_v25 = vld [vmem:[#allocation7 + $0x10] sm:$0xff]  ;;  %v2134_v26 = vld [vmem:[#allocation7 + $0x8] sm:$0xff] }
  0x1d   :  { %2207 = vmatpush.bf16.msra.mxu3 %v2434_v2  ;;  %259 = vmatpush.bf16.msra.mxu0 %v2434_v2  ;;  %v2144_v24 = vld [vmem:[#allocation7 + $0x58] sm:$0xff]  ;;  %v2143_v28 = vld [vmem:[#allocation7 + $0x50] sm:$0xff]  ;;  %v2133_v29 = vld [vmem:[#allocation7] sm:$0xff] }
  0x1e   :  { %2222 = vmatpush.bf16.msra.mxu2 %v2139_v16  ;;  %2214 = vmatpush.bf16.msra.mxu1 %v2147_v17  ;;  %v2476_v27 = vld [vmem:[#allocation2 + $0x38] sm:$0xff]  ;;  %v2142_v30 = vld [vmem:[#allocation7 + $0x48] sm:$0xff]  ;;  %v2141_v31 = vld [vmem:[#allocation7 + $0x40] sm:$0xff] }
  0x1f   :  { %v2156_v56 = vld [vmem:[#allocation7 + $0xb8] sm:$0xff]  ;;  %v2155_v57 = vld [vmem:[#allocation7 + $0xb0] sm:$0xff]  ;;  %v2154_v58 = vld [vmem:[#allocation7 + $0xa8] sm:$0xff] }
  0x20   :  { %v2153_v59 = vld [vmem:[#allocation7 + $0xa0] sm:$0xff]  ;;  %v2152_v60 = vld [vmem:[#allocation7 + $0x98] sm:$0xff]  ;;  %v2151_v61 = vld [vmem:[#allocation7 + $0x90] sm:$0xff] }
  0x21   :  { %2208 = vmatpush.bf16.msra.mxu3 %v2438_v3  ;;  %260 = vmatpush.bf16.msra.mxu0 %v2438_v3  ;;  %v2150_v62 = vld [vmem:[#allocation7 + $0x88] sm:$0xff]  ;;  %v2149_v63 = vld [vmem:[#allocation7 + $0x80] sm:$0xff] }
  0x22   :  { %2223 = vmatpush.bf16.msra.mxu2 %v2138_v18  ;;  %2215 = vmatpush.bf16.msra.mxu1 %v2146_v19 }
  0x25   :  { %2209 = vmatpush.bf16.msra.mxu3 %v2442_v4  ;;  %261 = vmatpush.bf16.msra.mxu0 %v2442_v4 }
  0x26   :  { %2224 = vmatpush.bf16.msra.mxu2 %v2137_v20  ;;  %2216 = vmatpush.bf16.msra.mxu1 %v2145_v21 }
  0x29   :  { %2210 = vmatpush.bf16.msra.mxu3 %v2127_v5  ;;  %262 = vmatpush.bf16.msra.mxu0 %v2127_v5 }
  0x2a   :  { %2225 = vmatpush.bf16.msra.mxu2 %v2136_v23  ;;  %2217 = vmatpush.bf16.msra.mxu1 %v2144_v24 }
  0x2d   :  { %2211 = vmatpush.bf16.msra.mxu3 %v2447_v6  ;;  %263 = vmatpush.bf16.msra.mxu0 %v2447_v6 }
  0x2e   :  { %2226 = vmatpush.bf16.msra.mxu2 %v2135_v25  ;;  %2218 = vmatpush.bf16.msra.mxu1 %v2143_v28 }
  0x31   :  { %2212 = vmatpush.bf16.msra.mxu3 %v2450_v7  ;;  %264 = vmatpush.bf16.msra.mxu0 %v2450_v7 }
  0x32   :  { %2227 = vmatpush.bf16.msra.mxu2 %v2134_v26  ;;  %2219 = vmatpush.bf16.msra.mxu1 %v2142_v30 }
  0x34   :  { %275 = vmatmul.bf16.vlgmr.msra.gmra.mxu3 %v2453_v8  ;;  %265 = vmatmul.bf16.vlgmr.msra.gmra.mxu0 %v2458_v9 }
  0x35   :  { %362 = vmatpush.bf16.msrb.mxu0 %v2148_v15 }
  0x36   :  { %2228 = vmatpush.bf16.msra.mxu2 %v2133_v29  ;;  %2220 = vmatpush.bf16.msra.mxu1 %v2141_v31 }
  0x39   :  { %363 = vmatpush.bf16.msrb.mxu0 %v2147_v17  ;;  %477 = vmatmul.bf16.vlgmr.msra.gmra.mxu2 %v2127_v5 }
  0x3d   :  { %364 = vmatpush.bf16.msrb.mxu0 %v2146_v19 }
  0x41   :  { %365 = vmatpush.bf16.msrb.mxu0 %v2145_v21 }
  0x44   :  { %280 = vmatmul.bf16.gmra.mxu3 %v2461_v10  ;;  %270 = vmatmul.bf16.gmra.mxu0 %v2464_v11 }
  0x45   :  { %366 = vmatpush.bf16.msrb.mxu0 %v2144_v24 }
  0x49   :  { %367 = vmatpush.bf16.msrb.mxu0 %v2143_v28  ;;  %482 = vmatmul.bf16.gmra.mxu2 %v2442_v4 }
  0x4d   :  { %368 = vmatpush.bf16.msrb.mxu0 %v2142_v30 }
  0x51   :  { %369 = vmatpush.bf16.msrb.mxu0 %v2141_v31  ;;  %v2163_v31 = vld [vmem:[#allocation7 + $0xf0] sm:$0xff] }
  0x54   :  { %285 = vmatmul.bf16.gmra.mxu3 %v2467_v12 }
  0x55   :  { %459 = vmatpush.bf16.msra.mxu0 %v2140_v14 }
  0x59   :  { %460 = vmatpush.bf16.msra.mxu0 %v2139_v16  ;;  %487 = vmatmul.bf16.gmra.mxu2 %v2438_v3 }
  0x5d   :  { %461 = vmatpush.bf16.msra.mxu0 %v2138_v18 }
  0x61   :  { %462 = vmatpush.bf16.msra.mxu0 %v2137_v20 }
  0x64   :  { %290 = vmatmul.bf16.gmra.mxu3 %v2470_v13 }
  0x65   :  { %463 = vmatpush.bf16.msra.mxu0 %v2136_v23 }
  0x69   :  { %464 = vmatpush.bf16.msra.mxu0 %v2135_v25  ;;  %492 = vmatmul.bf16.gmra.mxu2 %v2434_v2 }
  0x6d   :  { %465 = vmatpush.bf16.msra.mxu0 %v2134_v26 }
  0x71   :  { %466 = vmatpush.bf16.msra.mxu0 %v2133_v29  ;;  %v2164_v29 = vld [vmem:[#allocation7 + $0xf8] sm:$0xff] }
  0x74   :  { %295 = vmatmul.bf16.gmra.mxu3 %v2473_v22 }
  0x79   :  { %497 = vmatmul.bf16.gmra.mxu2 %v2430_v1 }
  0x84   :  { %300 = vmatmul.bf16.gmra.mxu3 %v2476_v27 }
  0x89   :  { %502 = vmatmul.bf16.gmra.mxu2 %v2427_v0 }
  0xb1   :  { %v266_v33 = vpop.f32.mrf.mxu0 }
  0xb7   :  { %v276_v32 = vpop.f32.mrf.mxu3 }
  0xb9   :  { %v268_v36 = vpop.f32.mrf.mxu0 }
  0xba   :  { %v306_v37 = vpack.c.bf16 %v268_v36, %v266_v33 }
  0xbc   :  { %370 = vmatmul.bf16.vlgmr.msrb.gmra.mxu0 %v306_v37 }
  0xbd   :  { %613 = vmatpush.bf16.msrb.mxu0 %v2156_v56 }
  0xbf   :  { %v278_v34 = vpop.f32.mrf.mxu3 }
  0xc0   :  { %v308_v35 = vpack.c.bf16 %v278_v34, %v276_v32  ;;  %v2162_v32 = vld [vmem:[#allocation7 + $0xe8] sm:$0xff] }
  0xc1   :  { %v271_v39 = vpop.f32.mrf.mxu0  ;;  %614 = vmatpush.bf16.msrb.mxu0 %v2155_v57 }
  0xc2   :  { %380 = vmatmul.bf16.vlgmr.msra.gmra.mxu1 %v308_v35 }
  0xc5   :  { %615 = vmatpush.bf16.msrb.mxu0 %v2154_v58 }
  0xc7   :  { %v281_v38 = vpop.f32.mrf.mxu3 }
  0xc9   :  { %v273_v42 = vpop.f32.mrf.mxu0  ;;  %616 = vmatpush.bf16.msrb.mxu0 %v2153_v59 }
  0xca   :  { %v307_v44 = vpack.c.bf16 %v273_v42, %v271_v39  ;;  %v2158_v42 = vld [vmem:[#allocation7 + $0xc8] sm:$0xff] }
  0xcc   :  { %375 = vmatmul.bf16.gmra.mxu0 %v307_v44 }
  0xcd   :  { %617 = vmatpush.bf16.msrb.mxu0 %v2152_v60 }
  0xcf   :  { %v283_v40 = vpop.f32.mrf.mxu3 }
  0xd0   :  { %v309_v41 = vpack.c.bf16 %v283_v40, %v281_v38  ;;  %v2159_v40 = vld [vmem:[#allocation7 + $0xd0] sm:$0xff] }
  0xd1   :  { %618 = vmatpush.bf16.msrb.mxu0 %v2151_v61 }
  0xd2   :  { %385 = vmatmul.bf16.gmra.mxu1 %v309_v41 }
  0xd5   :  { %619 = vmatpush.bf16.msrb.mxu0 %v2150_v62 }
  0xd7   :  { %v286_v43 = vpop.f32.mrf.mxu3 }
  0xd9   :  { %620 = vmatpush.bf16.msrb.mxu0 %v2149_v63 }
  0xdc   :  { %467 = vmatmul.bf16.vlgmr.msra.gmra.mxu0 %v2450_v7 }
  0xdf   :  { %v288_v45 = vpop.f32.mrf.mxu3 }
  0xe0   :  { %v310_v46 = vpack.c.bf16 %v288_v45, %v286_v43  ;;  %v2157_v43 = vld [vmem:[#allocation7 + $0xc0] sm:$0xff] }
  0xe2   :  { %390 = vmatmul.bf16.gmra.mxu1 %v310_v46 }
  0xe7   :  { %v291_v47 = vpop.f32.mrf.mxu3 }
  0xec   :  { %472 = vmatmul.bf16.gmra.mxu0 %v2447_v6 }
  0xef   :  { %v293_v48 = vpop.f32.mrf.mxu3 }
  0xf0   :  { %v311_v49 = vpack.c.bf16 %v293_v48, %v291_v47 }
  0xf2   :  { %395 = vmatmul.bf16.gmra.mxu1 %v311_v49 }
  0xf7   :  { %v296_v50 = vpop.f32.mrf.mxu3 }
  0xff   :  { %v298_v51 = vpop.f32.mrf.mxu3 }
 0x100   :  { %v312_v52 = vpack.c.bf16 %v298_v51, %v296_v50  ;;  %v478_v50 = vpop.f32.mrf.mxu2 }
 0x102   :  { %400 = vmatmul.bf16.gmra.mxu1 %v312_v52 }
 0x107   :  { %v301_v53 = vpop.f32.mrf.mxu3 }
 0x108   :  { %v480_v61 = vpop.f32.mrf.mxu2 }
 0x10f   :  { %v303_v54 = vpop.f32.mrf.mxu3 }
 0x110   :  { %v313_v55 = vpack.c.bf16 %v303_v54, %v301_v53 }
 0x112   :  { %405 = vmatmul.bf16.gmra.mxu1 %v313_v55  ;;  %508 = vmatpush.bf16.msrb.mxu3 %v313_v55 }
 0x116   :  { %509 = vmatpush.bf16.msrb.mxu3 %v312_v52  ;;  %v2494_v52 = vld [vmem:[#allocation8] ss:$0 sm:$0xff] }
 0x11a   :  { %510 = vmatpush.bf16.msrb.mxu3 %v311_v49 }
 0x11e   :  { %511 = vmatpush.bf16.msrb.mxu3 %v310_v46 }
 0x122   :  { %512 = vmatpush.bf16.msrb.mxu3 %v309_v41 }
 0x126   :  { %513 = vmatpush.bf16.msrb.mxu3 %v308_v35  ;;  %v2161_v35 = vld [vmem:[#allocation7 + $0xe0] sm:$0xff] }
 0x12a   :  { %514 = vmatpush.bf16.msrb.mxu3 %v307_v44 }
 0x12e   :  { %515 = vmatpush.bf16.msrb.mxu3 %v306_v37  ;;  %v2160_v37 = vld [vmem:[#allocation7 + $0xd8] sm:$0xff] }
 0x131   :  { %516 = vmatmul.bf16.vlgmr.msrb.gmra.mxu3 %v2458_v9 }
 0x132   :  { %973 = vmatpush.bf16.msra.mxu3 %v2164_v29 }
 0x136   :  { %974 = vmatpush.bf16.msra.mxu3 %v2163_v31 }
 0x139   :  { %v371_v18 = vpop.f32.mrf.mxu0 }
 0x13a   :  { %975 = vmatpush.bf16.msra.mxu3 %v2162_v32 }
 0x13e   :  { %976 = vmatpush.bf16.msra.mxu3 %v2161_v35 }
 0x13f   :  { %v381_v53 = vpop.f32.mrf.mxu1 }
 0x141   :  { %521 = vmatmul.bf16.gmra.mxu3 %v2464_v11  ;;  %v373_v20 = vpop.f32.mrf.mxu0 }
 0x142   :  { %977 = vmatpush.bf16.msra.mxu3 %v2160_v37 }
 0x146   :  { %978 = vmatpush.bf16.msra.mxu3 %v2159_v40 }
 0x147   :  { %v383_v63 = vpop.f32.mrf.mxu1 }
 0x149   :  { %v376_v24 = vpop.f32.mrf.mxu0 }
 0x14a   :  { %979 = vmatpush.bf16.msra.mxu3 %v2158_v42 }
 0x14e   :  { %980 = vmatpush.bf16.msra.mxu3 %v2157_v43 }
 0x151   :  { %526 = vmatmul.bf16.gmra.mxu3 %v2453_v8  ;;  %v378_v26 = vpop.f32.mrf.mxu0 }
 0x159   :  { %v468_v34 = vpop.f32.mrf.mxu0 }
 0x15a   :  { %v469_v49 = vadd.f32 %v468_v34, %v371_v18 }
 0x161   :  { %531 = vmatmul.bf16.gmra.mxu3 %v2461_v10  ;;  %v470_v39 = vpop.f32.mrf.mxu0 }
 0x162   :  { %v471_v54 = vadd.f32 %v470_v39, %v373_v20  ;;  %v479_v20 = vadd.f32 %v478_v50, %v381_v53 }
 0x169   :  { %v473_v44 = vpop.f32.mrf.mxu0 }
 0x171   :  { %536 = vmatmul.bf16.gmra.mxu3 %v2467_v12  ;;  %v475_v47 = vpop.f32.mrf.mxu0 }
 0x181   :  { %541 = vmatmul.bf16.gmra.mxu3 %v2470_v13 }
 0x191   :  { %546 = vmatmul.bf16.gmra.mxu3 %v2473_v22 }
 0x1a1   :  { %551 = vmatmul.bf16.gmra.mxu3 %v2476_v27 }
 0x1b4   :  { %v517_v0 = vpop.f32.mrf.mxu3 }
 0x1bc   :  { %v519_v1 = vpop.f32.mrf.mxu3 }
 0x1bd   :  { %v557_v2 = vpack.c.bf16 %v519_v1, %v517_v0  ;;  %v474_v1 = vadd.f32 %v473_v44, %v376_v24 }
 0x1bf   :  { %621 = vmatmul.bf16.vlgmr.msrb.gmra.mxu0 %v557_v2 }
 0x1c4   :  { %v522_v3 = vpop.f32.mrf.mxu3 }
 0x1cc   :  { %v524_v4 = vpop.f32.mrf.mxu3 }
 0x1cd   :  { %v558_v5 = vpack.c.bf16 %v524_v4, %v522_v3  ;;  %v476_v3 = vadd.f32 %v475_v47, %v378_v26 }
 0x1cf   :  { %626 = vmatmul.bf16.gmra.mxu0 %v558_v5  ;;  %v483_v5 = vpop.f32.mrf.mxu2 }
 0x1d4   :  { %v527_v6 = vpop.f32.mrf.mxu3 }
 0x1dc   :  { %v529_v7 = vpop.f32.mrf.mxu3 }
 0x1dd   :  { %v559_v14 = vpack.c.bf16 %v529_v7, %v527_v6 }
 0x1df   :  { %631 = vmatmul.bf16.gmra.mxu0 %v559_v14  ;;  %v386_v14 = vpop.f32.mrf.mxu1 }
 0x1e0   :  { %v484_v37 = vadd.f32 %v483_v5, %v386_v14 }
 0x1e4   :  { %v532_v15 = vpop.f32.mrf.mxu3 }
 0x1ec   :  { %v534_v16 = vpop.f32.mrf.mxu3 }
 0x1ed   :  { %v560_v17 = vpack.c.bf16 %v534_v16, %v532_v15 }
 0x1ef   :  { %636 = vmatmul.bf16.gmra.mxu0 %v560_v17 }
 0x1f4   :  { %v537_v19 = vpop.f32.mrf.mxu3 }
 0x1fc   :  { %v539_v21 = vpop.f32.mrf.mxu3 }
 0x1fd   :  { %v561_v23 = vpack.c.bf16 %v539_v21, %v537_v19  ;;  %v485_v21 = vpop.f32.mrf.mxu2 }
 0x1ff   :  { %641 = vmatmul.bf16.gmra.mxu0 %v561_v23  ;;  %v388_v23 = vpop.f32.mrf.mxu1 }
 0x200   :  { %v486_v39 = vadd.f32 %v485_v21, %v388_v23 }
 0x204   :  { %v542_v25 = vpop.f32.mrf.mxu3 }
 0x205   :  { %v488_v31 = vpop.f32.mrf.mxu2 }
 0x207   :  { %v391_v34 = vpop.f32.mrf.mxu1 }
 0x208   :  { %v489_v53 = vadd.f32 %v488_v31, %v391_v34 }
 0x20c   :  { %v544_v28 = vpop.f32.mrf.mxu3 }
 0x20d   :  { %v562_v30 = vpack.c.bf16 %v544_v28, %v542_v25  ;;  %v481_v25 = vadd.f32 %v480_v61, %v383_v63  ;;  %v490_v40 = vpop.f32.mrf.mxu2 }
 0x20f   :  { %646 = vmatmul.bf16.gmra.mxu0 %v562_v30 }
 0x214   :  { %v547_v33 = vpop.f32.mrf.mxu3 }
 0x215   :  { %v493_v50 = vpop.f32.mrf.mxu2 }
 0x21c   :  { %v549_v36 = vpop.f32.mrf.mxu3 }
 0x21d   :  { %v563_v38 = vpack.c.bf16 %v549_v36, %v547_v33 }
 0x21f   :  { %651 = vmatmul.bf16.gmra.mxu0 %v563_v38 }
 0x224   :  { %v552_v41 = vpop.f32.mrf.mxu3 }
 0x22c   :  { %v554_v45 = vpop.f32.mrf.mxu3 }
 0x22d   :  { %v564_v46 = vpack.c.bf16 %v554_v45, %v552_v41  ;;  %v393_v41 = vpop.f32.mrf.mxu1 }
 0x22f   :  { %656 = vmatmul.bf16.gmra.mxu0 %v564_v46 }
 0x23c   :  { %v622_v48 = vpop.f32.mrf.mxu0 }
 0x23d   :  { %v662_v51 = vadd.f32 %v622_v48, %v469_v49 }
 0x23f   :  { %v682_v56 = vadd.f32 %v2494_v52, %v662_v51  ;;  %v396_v51 = vpop.f32.mrf.mxu1 }
 0x241   :  { %v698_v59 = vmax.f32 %v682_v56, 0.0 }
 0x244   :  { %v624_v55 = vpop.f32.mrf.mxu0 }
 0x245   :  { %v663_v57 = vadd.f32 %v624_v55, %v471_v54  ;;  %v491_v55 = vadd.f32 %v490_v40, %v393_v41 }
 0x247   :  { %v683_v58 = vadd.f32 %v2494_v52, %v663_v57  ;;  %v398_v61 = vpop.f32.mrf.mxu1 }
 0x249   :  { %v699_v60 = vmax.f32 %v683_v58, 0.0 }
 0x24b   :  { %v2498_v62 = vpack.c.bf16 %v699_v60, %v698_v59  ;;  %v495_v59 = vpop.f32.mrf.mxu2 }
 0x24c   :  { %v627_v0 = vpop.f32.mrf.mxu0 }
 0x24d   :  { %981 = vmatmul.bf16.vlgmr.msra.gmra.mxu3 %v2498_v62  ;;  %v664_v2 = vadd.f32 %v627_v0, %v474_v1 }
 0x24f   :  { %v684_v6 = vadd.f32 %v2494_v52, %v664_v2 }
 0x251   :  { %v700_v16 = vmax.f32 %v684_v6, 0.0  ;;  %v401_v6 = vpop.f32.mrf.mxu1 }
 0x254   :  { %v629_v4 = vpop.f32.mrf.mxu0 }
 0x255   :  { %v665_v7 = vadd.f32 %v629_v4, %v476_v3  ;;  %v494_v3 = vadd.f32 %v493_v50, %v396_v51  ;;  %v498_v4 = vpop.f32.mrf.mxu2 }
 0x257   :  { %v685_v15 = vadd.f32 %v2494_v52, %v665_v7  ;;  %v496_v7 = vadd.f32 %v495_v59, %v398_v61 }
 0x259   :  { %v701_v17 = vmax.f32 %v685_v15, 0.0 }
 0x25b   :  { %v2503_v18 = vpack.c.bf16 %v701_v17, %v700_v16 }
 0x25c   :  { %v632_v19 = vpop.f32.mrf.mxu0 }
 0x25d   :  { %986 = vmatmul.bf16.gmra.mxu3 %v2503_v18  ;;  %v666_v24 = vadd.f32 %v632_v19, %v479_v20  ;;  %v500_v21 = vpop.f32.mrf.mxu2 }
 0x25f   :  { %v686_v28 = vadd.f32 %v2494_v52, %v666_v24  ;;  %v403_v24 = vpop.f32.mrf.mxu1 }
 0x261   :  { %v702_v32 = vmax.f32 %v686_v28, 0.0 }
 0x264   :  { %v634_v26 = vpop.f32.mrf.mxu0 }
 0x265   :  { %v667_v29 = vadd.f32 %v634_v26, %v481_v25  ;;  %v499_v26 = vadd.f32 %v498_v4, %v401_v6  ;;  %v503_v34 = vpop.f32.mrf.mxu2 }
 0x267   :  { %v687_v30 = vadd.f32 %v2494_v52, %v667_v29  ;;  %v501_v29 = vadd.f32 %v500_v21, %v403_v24 }
 0x269   :  { %v703_v33 = vmax.f32 %v687_v30, 0.0 }
 0x26b   :  { %v2508_v35 = vpack.c.bf16 %v703_v33, %v702_v32  ;;  %v406_v33 = vpop.f32.mrf.mxu1 }
 0x26c   :  { %v637_v36 = vpop.f32.mrf.mxu0  ;;  %v504_v41 = vadd.f32 %v503_v34, %v406_v33 }
 0x26d   :  { %991 = vmatmul.bf16.gmra.mxu3 %v2508_v35  ;;  %v668_v38 = vadd.f32 %v637_v36, %v484_v37 }
 0x26f   :  { %v688_v43 = vadd.f32 %v2494_v52, %v668_v38 }
 0x271   :  { %v704_v46 = vmax.f32 %v688_v43, 0.0  ;;  %v505_v43 = vpop.f32.mrf.mxu2 }
 0x274   :  { %v639_v42 = vpop.f32.mrf.mxu0 }
 0x275   :  { %v669_v44 = vadd.f32 %v639_v42, %v486_v39  ;;  %v408_v42 = vpop.f32.mrf.mxu1 }
 0x277   :  { %v689_v45 = vadd.f32 %v2494_v52, %v669_v44 }
 0x279   :  { %v705_v47 = vmax.f32 %v689_v45, 0.0  ;;  %v506_v45 = vadd.f32 %v505_v43, %v408_v42 }
 0x27b   :  { %v2513_v48 = vpack.c.bf16 %v705_v47, %v704_v46 }
 0x27c   :  { %v642_v49 = vpop.f32.mrf.mxu0 }
 0x27d   :  { %996 = vmatmul.bf16.gmra.mxu3 %v2513_v48  ;;  %v670_v54 = vadd.f32 %v642_v49, %v489_v53 }
 0x27f   :  { %v690_v57 = vadd.f32 %v2494_v52, %v670_v54 }
 0x281   :  { %v706_v63 = vmax.f32 %v690_v57, 0.0  ;;  %v2165_v57 = vld [vmem:[#allocation7 + $0x100] sm:$0xff] }
 0x284   :  { %v644_v56 = vpop.f32.mrf.mxu0 }
 0x285   :  { %v671_v58 = vadd.f32 %v644_v56, %v491_v55  ;;  %v2171_v55 = vld [vmem:[#allocation7 + $0x130] sm:$0xff]  ;;  %v2166_v56 = vld [vmem:[#allocation7 + $0x108] sm:$0xff] }
 0x287   :  { %v691_v60 = vadd.f32 %v2494_v52, %v671_v58 }
 0x289   :  { %v707_v0 = vmax.f32 %v691_v60, 0.0 }
 0x28b   :  { %v718_v1 = vpack.c.bf16 %v707_v0, %v706_v63 }
 0x28c   :  { %v647_v2 = vpop.f32.mrf.mxu0 }
 0x28d   :  { %1001 = vmatmul.bf16.gmra.mxu3 %v718_v1  ;;  %v672_v5 = vadd.f32 %v647_v2, %v494_v3 }
 0x28f   :  { %v692_v15 = vadd.f32 %v2494_v52, %v672_v5 }
 0x291   :  { %v708_v19 = vmax.f32 %v692_v15, 0.0 }
 0x294   :  { %v649_v14 = vpop.f32.mrf.mxu0 }
 0x295   :  { %v673_v16 = vadd.f32 %v649_v14, %v496_v7 }
 0x297   :  { %v693_v17 = vadd.f32 %v2494_v52, %v673_v16 }
 0x299   :  { %v709_v20 = vmax.f32 %v693_v17, 0.0 }
 0x29b   :  { %v719_v23 = vpack.c.bf16 %v709_v20, %v708_v19 }
 0x29c   :  { %v652_v25 = vpop.f32.mrf.mxu0 }
 0x29d   :  { %1006 = vmatmul.bf16.gmra.mxu3 %v719_v23  ;;  %v674_v28 = vadd.f32 %v652_v25, %v499_v26 }
 0x29f   :  { %v694_v31 = vadd.f32 %v2494_v52, %v674_v28  ;;  %v2180_v28 = vld [vmem:[#allocation7 + $0x178] sm:$0xff] }
 0x2a1   :  { %v710_v37 = vmax.f32 %v694_v31, 0.0  ;;  %v2177_v31 = vld [vmem:[#allocation7 + $0x160] sm:$0xff] }
 0x2a4   :  { %v654_v30 = vpop.f32.mrf.mxu0 }
 0x2a5   :  { %v675_v32 = vadd.f32 %v654_v30, %v501_v29  ;;  %v2179_v29 = vld [vmem:[#allocation7 + $0x170] sm:$0xff]  ;;  %v2178_v30 = vld [vmem:[#allocation7 + $0x168] sm:$0xff] }
 0x2a7   :  { %v695_v36 = vadd.f32 %v2494_v52, %v675_v32  ;;  %v2176_v32 = vld [vmem:[#allocation7 + $0x158] sm:$0xff] }
 0x2a9   :  { %v711_v38 = vmax.f32 %v695_v36, 0.0 }
 0x2ab   :  { %v720_v39 = vpack.c.bf16 %v711_v38, %v710_v37 }
 0x2ac   :  { %v657_v40 = vpop.f32.mrf.mxu0 }
 0x2ad   :  { %1011 = vmatmul.bf16.gmra.mxu3 %v720_v39  ;;  %v676_v44 = vadd.f32 %v657_v40, %v504_v41 }
 0x2af   :  { %v696_v47 = vadd.f32 %v2494_v52, %v676_v44 }
 0x2b1   :  { %v712_v51 = vmax.f32 %v696_v47, 0.0 }
 0x2b4   :  { %v659_v46 = vpop.f32.mrf.mxu0 }
 0x2b5   :  { %v677_v49 = vadd.f32 %v659_v46, %v506_v45  ;;  %v2188_v46 = vld [vmem:[#allocation7 + $0x1b8] sm:$0xff] }
 0x2b7   :  { %v697_v50 = vadd.f32 %v2494_v52, %v677_v49  ;;  %v2172_v52 = vld [vmem:[#allocation7 + $0x138] sm:$0xff]  ;;  %v2187_v49 = vld [vmem:[#allocation7 + $0x1b0] sm:$0xff] }
 0x2b8   :  { %876 = vmatpush.bf16.msrb.mxu2 %v2172_v52 }
 0x2b9   :  { %v713_v53 = vmax.f32 %v697_v50, 0.0  ;;  %v2186_v50 = vld [vmem:[#allocation7 + $0x1a8] sm:$0xff] }
 0x2bb   :  { %v721_v54 = vpack.c.bf16 %v713_v53, %v712_v51  ;;  %v2185_v53 = vld [vmem:[#allocation7 + $0x1a0] sm:$0xff] }
 0x2bc   :  { %877 = vmatpush.bf16.msrb.mxu2 %v2171_v55 }
 0x2bd   :  { %771 = vmatpush.bf16.msrb.mxu1 %v721_v54  ;;  %1016 = vmatmul.bf16.gmra.mxu3 %v721_v54 }
 0x2c1   :  { %772 = vmatpush.bf16.msrb.mxu1 %v720_v39 }
 0x2c5   :  { %773 = vmatpush.bf16.msrb.mxu1 %v719_v23 }
 0x2c9   :  { %774 = vmatpush.bf16.msrb.mxu1 %v718_v1 }
 0x2cd   :  { %775 = vmatpush.bf16.msrb.mxu1 %v2513_v48  ;;  %v2170_v48 = vld [vmem:[#allocation7 + $0x128] sm:$0xff] }
 0x2ce   :  { %878 = vmatpush.bf16.msrb.mxu2 %v2170_v48  ;;  %v2184_v48 = vld [vmem:[#allocation7 + $0x198] sm:$0xff] }
 0x2d0   :  { %v982_v52 = vpop.f32.mrf.mxu3 }
 0x2d1   :  { %776 = vmatpush.bf16.msrb.mxu1 %v2508_v35  ;;  %v2167_v35 = vld [vmem:[#allocation7 + $0x110] sm:$0xff] }
 0x2d5   :  { %777 = vmatpush.bf16.msrb.mxu1 %v2503_v18  ;;  %v2169_v18 = vld [vmem:[#allocation7 + $0x120] sm:$0xff] }
 0x2d6   :  { %879 = vmatpush.bf16.msrb.mxu2 %v2169_v18 }
 0x2d9   :  { %778 = vmatpush.bf16.msrb.mxu1 %v2498_v62  ;;  %v2168_v62 = vld [vmem:[#allocation7 + $0x118] sm:$0xff] }
 0x2da   :  { %880 = vmatpush.bf16.msrb.mxu2 %v2168_v62  ;;  %v2183_v62 = vld [vmem:[#allocation7 + $0x190] sm:$0xff] }
 0x2dc   :  { %779 = vmatmul.bf16.vlgmr.msrb.gmra.mxu1 %v2458_v9 }
 0x2dd   :  { %1127 = vmatpush.bf16.msra.mxu1 %v2180_v28 }
 0x2de   :  { %881 = vmatpush.bf16.msrb.mxu2 %v2167_v35 }
 0x2e1   :  { %1128 = vmatpush.bf16.msra.mxu1 %v2179_v29 }
 0x2e2   :  { %882 = vmatpush.bf16.msrb.mxu2 %v2166_v56 }
 0x2e5   :  { %1129 = vmatpush.bf16.msra.mxu1 %v2178_v30 }
 0x2e6   :  { %883 = vmatpush.bf16.msrb.mxu2 %v2165_v57  ;;  %v2182_v57 = vld [vmem:[#allocation7 + $0x188] sm:$0xff] }
 0x2e9   :  { %1130 = vmatpush.bf16.msra.mxu1 %v2177_v31 }
 0x2ec   :  { %784 = vmatmul.bf16.gmra.mxu1 %v2464_v11 }
 0x2ed   :  { %1131 = vmatpush.bf16.msra.mxu1 %v2176_v32 }
 0x2fc   :  { %789 = vmatmul.bf16.gmra.mxu1 %v2453_v8 }
 0x30c   :  { %794 = vmatmul.bf16.gmra.mxu1 %v2461_v10 }
 0x31c   :  { %799 = vmatmul.bf16.gmra.mxu1 %v2467_v12 }
 0x32c   :  { %804 = vmatmul.bf16.gmra.mxu1 %v2470_v13 }
 0x33c   :  { %809 = vmatmul.bf16.gmra.mxu1 %v2473_v22 }
 0x34c   :  { %814 = vmatmul.bf16.gmra.mxu1 %v2476_v27 }
 0x359   :  { %v780_v58 = vpop.f32.mrf.mxu1 }
 0x361   :  { %v782_v59 = vpop.f32.mrf.mxu1 }
 0x362   :  { %v820_v60 = vpack.c.bf16 %v782_v59, %v780_v58  ;;  %v984_v58 = vpop.f32.mrf.mxu3  ;;  %v2181_v59 = vld [vmem:[#allocation7 + $0x180] sm:$0xff] }
 0x364   :  { %884 = vmatmul.bf16.vlgmr.msrb.gmra.mxu2 %v820_v60 }
 0x369   :  { %v785_v61 = vpop.f32.mrf.mxu1 }
 0x371   :  { %v787_v63 = vpop.f32.mrf.mxu1 }
 0x372   :  { %v821_v0 = vpack.c.bf16 %v787_v63, %v785_v61 }
 0x374   :  { %889 = vmatmul.bf16.gmra.mxu2 %v821_v0 }
 0x379   :  { %v790_v1 = vpop.f32.mrf.mxu1 }
 0x381   :  { %v792_v2 = vpop.f32.mrf.mxu1 }
 0x382   :  { %v822_v3 = vpack.c.bf16 %v792_v2, %v790_v1 }
 0x384   :  { %894 = vmatmul.bf16.gmra.mxu2 %v822_v3 }
 0x389   :  { %v795_v4 = vpop.f32.mrf.mxu1 }
 0x391   :  { %v797_v5 = vpop.f32.mrf.mxu1 }
 0x392   :  { %v823_v6 = vpack.c.bf16 %v797_v5, %v795_v4 }
 0x394   :  { %899 = vmatmul.bf16.gmra.mxu2 %v823_v6 }
 0x399   :  { %v800_v7 = vpop.f32.mrf.mxu1 }
 0x3a1   :  { %v802_v14 = vpop.f32.mrf.mxu1 }
 0x3a2   :  { %v824_v15 = vpack.c.bf16 %v802_v14, %v800_v7 }
 0x3a4   :  { %904 = vmatmul.bf16.gmra.mxu2 %v824_v15 }
 0x3a9   :  { %v805_v16 = vpop.f32.mrf.mxu1 }
 0x3b1   :  { %v807_v17 = vpop.f32.mrf.mxu1 }
 0x3b2   :  { %v825_v19 = vpack.c.bf16 %v807_v17, %v805_v16 }
 0x3b4   :  { %909 = vmatmul.bf16.gmra.mxu2 %v825_v19 }
 0x3b9   :  { %v810_v20 = vpop.f32.mrf.mxu1 }
 0x3c1   :  { %v812_v21 = vpop.f32.mrf.mxu1 }
 0x3c2   :  { %v826_v23 = vpack.c.bf16 %v812_v21, %v810_v20 }
 0x3c4   :  { %914 = vmatmul.bf16.gmra.mxu2 %v826_v23 }
 0x3c9   :  { %v815_v24 = vpop.f32.mrf.mxu1 }
 0x3d1   :  { %v817_v25 = vpop.f32.mrf.mxu1 }
 0x3d2   :  { %v827_v26 = vpack.c.bf16 %v817_v25, %v815_v24 }
 0x3d4   :  { %919 = vmatmul.bf16.gmra.mxu2 %v827_v26  ;;  %1022 = vmatpush.bf16.msra.mxu0 %v827_v26 }
 0x3d8   :  { %1023 = vmatpush.bf16.msra.mxu0 %v826_v23 }
 0x3dc   :  { %1024 = vmatpush.bf16.msra.mxu0 %v825_v19 }
 0x3e0   :  { %1025 = vmatpush.bf16.msra.mxu0 %v824_v15 }
 0x3e4   :  { %1026 = vmatpush.bf16.msra.mxu0 %v823_v6  ;;  %v2544_v6 = vld [vmem:[#allocation8 + $0x1] ss:$0 sm:$0xff] }
 0x3e7   :  { %v885_v54 = vpop.f32.mrf.mxu2 }
 0x3e8   :  { %1027 = vmatpush.bf16.msra.mxu0 %v822_v3  ;;  %v983_v4 = vadd.f32 %v982_v52, %v885_v54 }
 0x3ec   :  { %1028 = vmatpush.bf16.msra.mxu0 %v821_v0  ;;  %v987_v0 = vpop.f32.mrf.mxu3 }
 0x3ef   :  { %v887_v35 = vpop.f32.mrf.mxu2 }
 0x3f0   :  { %1029 = vmatpush.bf16.msra.mxu0 %v820_v60  ;;  %v985_v14 = vadd.f32 %v984_v58, %v887_v35 }
 0x3f3   :  { %1030 = vmatmul.bf16.vlgmr.msra.gmra.mxu0 %v2458_v9  ;;  %v2175_v9 = vld [vmem:[#allocation7 + $0x150] sm:$0xff] }
 0x3f4   :  { %1132 = vmatpush.bf16.msra.mxu1 %v2175_v9  ;;  %1488 = vmatpush.bf16.msrb.mxu0 %v2188_v46  ;;  %v989_v2 = vpop.f32.mrf.mxu3 }
 0x3f7   :  { %v890_v63 = vpop.f32.mrf.mxu2 }
 0x3f8   :  { %1489 = vmatpush.bf16.msrb.mxu0 %v2187_v49  ;;  %v988_v29 = vadd.f32 %v987_v0, %v890_v63 }
 0x3fc   :  { %1490 = vmatpush.bf16.msrb.mxu0 %v2186_v50  ;;  %v992_v15 = vpop.f32.mrf.mxu3 }
 0x3ff   :  { %v892_v1 = vpop.f32.mrf.mxu2 }
 0x400   :  { %1491 = vmatpush.bf16.msrb.mxu0 %v2185_v53  ;;  %v990_v31 = vadd.f32 %v989_v2, %v892_v1 }
 0x403   :  { %1035 = vmatmul.bf16.gmra.mxu0 %v2464_v11  ;;  %v2174_v11 = vld [vmem:[#allocation7 + $0x148] sm:$0xff] }
 0x404   :  { %1133 = vmatpush.bf16.msra.mxu1 %v2174_v11  ;;  %1492 = vmatpush.bf16.msrb.mxu0 %v2184_v48  ;;  %v994_v28 = vpop.f32.mrf.mxu3 }
 0x407   :  { %v895_v7 = vpop.f32.mrf.mxu2 }
 0x408   :  { %1493 = vmatpush.bf16.msrb.mxu0 %v2183_v62 }
 0x40c   :  { %1494 = vmatpush.bf16.msrb.mxu0 %v2182_v57 }
 0x40f   :  { %v897_v25 = vpop.f32.mrf.mxu2 }
 0x410   :  { %1495 = vmatpush.bf16.msrb.mxu0 %v2181_v59 }
 0x413   :  { %1040 = vmatmul.bf16.gmra.mxu0 %v2453_v8  ;;  %v2173_v8 = vld [vmem:[#allocation7 + $0x140] sm:$0xff] }
 0x414   :  { %1134 = vmatpush.bf16.msra.mxu1 %v2173_v8 }
 0x417   :  { %v900_v8 = vpop.f32.mrf.mxu2 }
 0x423   :  { %1045 = vmatmul.bf16.gmra.mxu0 %v2461_v10 }
 0x433   :  { %1050 = vmatmul.bf16.gmra.mxu0 %v2467_v12 }
 0x443   :  { %1055 = vmatmul.bf16.gmra.mxu0 %v2470_v13 }
 0x453   :  { %1060 = vmatmul.bf16.gmra.mxu0 %v2473_v22 }
 0x463   :  { %1065 = vmatmul.bf16.gmra.mxu0 %v2476_v27 }
 0x470   :  { %v1031_v10 = vpop.f32.mrf.mxu0 }
 0x478   :  { %v1033_v12 = vpop.f32.mrf.mxu0 }
 0x479   :  { %v1071_v33 = vpack.c.bf16 %v1033_v12, %v1031_v10  ;;  %v997_v12 = vpop.f32.mrf.mxu3 }
 0x47b   :  { %1135 = vmatmul.bf16.vlgmr.msra.gmra.mxu1 %v1071_v33 }
 0x480   :  { %v1036_v13 = vpop.f32.mrf.mxu0 }
 0x488   :  { %v1038_v34 = vpop.f32.mrf.mxu0 }
 0x489   :  { %v1072_v36 = vpack.c.bf16 %v1038_v34, %v1036_v13 }
 0x48b   :  { %1140 = vmatmul.bf16.gmra.mxu1 %v1072_v36 }
 0x490   :  { %v1041_v37 = vpop.f32.mrf.mxu0 }
 0x498   :  { %v1043_v38 = vpop.f32.mrf.mxu0 }
 0x499   :  { %v1073_v39 = vpack.c.bf16 %v1043_v38, %v1041_v37  ;;  %v993_v37 = vadd.f32 %v992_v15, %v895_v7  ;;  %v902_v38 = vpop.f32.mrf.mxu2 }
 0x49b   :  { %1145 = vmatmul.bf16.gmra.mxu1 %v1073_v39 }
 0x4a0   :  { %v1046_v40 = vpop.f32.mrf.mxu0 }
 0x4a1   :  { %v905_v46 = vpop.f32.mrf.mxu2 }
 0x4a8   :  { %v1048_v41 = vpop.f32.mrf.mxu0 }
 0x4a9   :  { %v1074_v22 = vpack.c.bf16 %v1048_v41, %v1046_v40  ;;  %v999_v40 = vpop.f32.mrf.mxu3  ;;  %v995_v41 = vadd.f32 %v994_v28, %v897_v25  ;;  %v907_v52 = vpop.f32.mrf.mxu2 }
 0x4aa   :  { %v1000_v54 = vadd.f32 %v999_v40, %v902_v38 }
 0x4ab   :  { %1150 = vmatmul.bf16.gmra.mxu1 %v1074_v22 }
 0x4b0   :  { %v1051_v42 = vpop.f32.mrf.mxu0 }
 0x4b1   :  { %v1002_v49 = vpop.f32.mrf.mxu3 }
 0x4b8   :  { %v1053_v43 = vpop.f32.mrf.mxu0 }
 0x4b9   :  { %v1075_v44 = vpack.c.bf16 %v1053_v43, %v1051_v42  ;;  %v1004_v62 = vpop.f32.mrf.mxu3 }
 0x4ba   :  { %v1005_v1 = vadd.f32 %v1004_v62, %v907_v52 }
 0x4bb   :  { %1155 = vmatmul.bf16.gmra.mxu1 %v1075_v44 }
 0x4c0   :  { %v1056_v27 = vpop.f32.mrf.mxu0 }
 0x4c1   :  { %v1007_v63 = vpop.f32.mrf.mxu3 }
 0x4c8   :  { %v1058_v45 = vpop.f32.mrf.mxu0 }
 0x4c9   :  { %v1076_v47 = vpack.c.bf16 %v1058_v45, %v1056_v27 }
 0x4cb   :  { %1160 = vmatmul.bf16.gmra.mxu1 %v1076_v47 }
 0x4d0   :  { %v1061_v51 = vpop.f32.mrf.mxu0 }
 0x4d8   :  { %v1063_v55 = vpop.f32.mrf.mxu0 }
 0x4d9   :  { %v1077_v18 = vpack.c.bf16 %v1063_v55, %v1061_v51  ;;  %v998_v51 = vadd.f32 %v997_v12, %v900_v8 }
 0x4db   :  { %1165 = vmatmul.bf16.gmra.mxu1 %v1077_v18 }
 0x4e0   :  { %v1066_v56 = vpop.f32.mrf.mxu0 }
 0x4e8   :  { %v1068_v60 = vpop.f32.mrf.mxu0 }
 0x4e9   :  { %v1078_v61 = vpack.c.bf16 %v1068_v60, %v1066_v56  ;;  %v910_v60 = vpop.f32.mrf.mxu2 }
 0x4eb   :  { %1170 = vmatmul.bf16.gmra.mxu1 %v1078_v61  ;;  %v1003_v61 = vadd.f32 %v1002_v49, %v905_v46 }
 0x4f1   :  { %v912_v7 = vpop.f32.mrf.mxu2 }
 0x4f8   :  { %v1136_v3 = vpop.f32.mrf.mxu1 }
 0x4f9   :  { %v1176_v5 = vadd.f32 %v1136_v3, %v983_v4 }
 0x4fb   :  { %v1197_v17 = vadd.f32 %v2544_v6, %v1176_v5 }
 0x4fd   :  { %v1213_v21 = vmax.f32 %v1197_v17, 0.0 }
 0x500   :  { %v1138_v16 = vpop.f32.mrf.mxu1 }
 0x501   :  { %v1177_v19 = vadd.f32 %v1138_v16, %v985_v14  ;;  %v1009_v16 = vpop.f32.mrf.mxu3 }
 0x502   :  { %v1010_v25 = vadd.f32 %v1009_v16, %v912_v7 }
 0x503   :  { %v1198_v20 = vadd.f32 %v2544_v6, %v1177_v19 }
 0x505   :  { %v1214_v23 = vmax.f32 %v1198_v20, 0.0  ;;  %v1008_v20 = vadd.f32 %v1007_v63, %v910_v60  ;;  %v2193_v60 = vld [vmem:[#allocation7 + $0x1e0] sm:$0xff]  ;;  %v2596_v63 = vld [vmem:[#allocation2 + $0x30] sm:$0xff] }
 0x507   :  { %v2548_v24 = vpack.c.bf16 %v1214_v23, %v1213_v21  ;;  %v915_v23 = vpop.f32.mrf.mxu2 }
 0x508   :  { %v1141_v26 = vpop.f32.mrf.mxu1 }
 0x509   :  { %1496 = vmatmul.bf16.vlgmr.msrb.gmra.mxu0 %v2548_v24  ;;  %v1178_v30 = vadd.f32 %v1141_v26, %v988_v29  ;;  %v1012_v26 = vpop.f32.mrf.mxu3 }
 0x50b   :  { %v1199_v9 = vadd.f32 %v2544_v6, %v1178_v30 }
 0x50d   :  { %v1215_v33 = vmax.f32 %v1199_v9, 0.0 }
 0x50f   :  { %v917_v8 = vpop.f32.mrf.mxu2 }
 0x510   :  { %v1143_v32 = vpop.f32.mrf.mxu1 }
 0x511   :  { %v1179_v11 = vadd.f32 %v1143_v32, %v990_v31  ;;  %v1014_v12 = vpop.f32.mrf.mxu3 }
 0x513   :  { %v1200_v10 = vadd.f32 %v2544_v6, %v1179_v11 }
 0x515   :  { %v1216_v13 = vmax.f32 %v1200_v10, 0.0 }
 0x517   :  { %v2553_v34 = vpack.c.bf16 %v1216_v13, %v1215_v33  ;;  %v1013_v33 = vadd.f32 %v1012_v26, %v915_v23  ;;  %v920_v40 = vpop.f32.mrf.mxu2 }
 0x518   :  { %v1146_v36 = vpop.f32.mrf.mxu1 }
 0x519   :  { %1501 = vmatmul.bf16.gmra.mxu0 %v2553_v34  ;;  %v1180_v39 = vadd.f32 %v1146_v36, %v993_v37  ;;  %v1015_v36 = vadd.f32 %v1014_v12, %v917_v8 }
 0x51b   :  { %v1201_v42 = vadd.f32 %v2544_v6, %v1180_v39 }
 0x51d   :  { %v1217_v27 = vmax.f32 %v1201_v42, 0.0 }
 0x51f   :  { %v922_v46 = vpop.f32.mrf.mxu2 }
 0x520   :  { %v1148_v22 = vpop.f32.mrf.mxu1 }
 0x521   :  { %v1181_v43 = vadd.f32 %v1148_v22, %v995_v41  ;;  %v1017_v22 = vpop.f32.mrf.mxu3 }
 0x523   :  { %v1202_v44 = vadd.f32 %v2544_v6, %v1181_v43 }
 0x525   :  { %v1218_v45 = vmax.f32 %v1202_v44, 0.0 }
 0x527   :  { %v2558_v47 = vpack.c.bf16 %v1218_v45, %v1217_v27  ;;  %v1018_v45 = vadd.f32 %v1017_v22, %v920_v40  ;;  %v2199_v40 = vld [vmem:[#allocation7 + $0x210] sm:$0xff]  ;;  %v2197_v22 = vld [vmem:[#allocation7 + $0x200] sm:$0xff] }
 0x528   :  { %v1151_v50 = vpop.f32.mrf.mxu1 }
 0x529   :  { %1506 = vmatmul.bf16.gmra.mxu0 %v2558_v47  ;;  %v1182_v53 = vadd.f32 %v1151_v50, %v998_v51  ;;  %v1019_v50 = vpop.f32.mrf.mxu3 }
 0x52a   :  { %v1020_v51 = vadd.f32 %v1019_v50, %v922_v46 }
 0x52b   :  { %v1203_v48 = vadd.f32 %v2544_v6, %v1182_v53 }
 0x52d   :  { %v1219_v56 = vmax.f32 %v1203_v48, 0.0 }
 0x530   :  { %v1153_v55 = vpop.f32.mrf.mxu1 }
 0x531   :  { %v1183_v18 = vadd.f32 %v1153_v55, %v1000_v54 }
 0x533   :  { %v1204_v35 = vadd.f32 %v2544_v6, %v1183_v18 }
 0x535   :  { %v1220_v57 = vmax.f32 %v1204_v35, 0.0  ;;  %v2578_v35 = vld [vmem:[#allocation2] sm:$0xff] }
 0x537   :  { %v2563_v58 = vpack.c.bf16 %v1220_v57, %v1219_v56  ;;  %v2584_v56 = vld [vmem:[#allocation2 + $0x10] sm:$0xff]  ;;  %v2587_v57 = vld [vmem:[#allocation2 + $0x18] sm:$0xff] }
 0x538   :  { %v1156_v59 = vpop.f32.mrf.mxu1 }
 0x539   :  { %1511 = vmatmul.bf16.gmra.mxu0 %v2563_v58  ;;  %v1184_v0 = vadd.f32 %v1156_v59, %v1003_v61  ;;  %v2194_v59 = vld [vmem:[#allocation7 + $0x1e8] sm:$0xff]  ;;  %v2192_v61 = vld [vmem:[#allocation7 + $0x1d8] sm:$0xff] }
 0x53b   :  { %v1205_v3 = vadd.f32 %v2544_v6, %v1184_v0  ;;  %v2191_v0 = vld [vmem:[#allocation7 + $0x1d0] sm:$0xff] }
 0x53d   :  { %v1221_v14 = vmax.f32 %v1205_v3, 0.0  ;;  %v2599_v3 = vld [vmem:[#allocation2 + $0x38] sm:$0xff] }
 0x540   :  { %v1158_v2 = vpop.f32.mrf.mxu1 }
 0x541   :  { %v1185_v4 = vadd.f32 %v1158_v2, %v1005_v1  ;;  %v2190_v1 = vld [vmem:[#allocation7 + $0x1c8] sm:$0xff]  ;;  %v2189_v2 = vld [vmem:[#allocation7 + $0x1c0] sm:$0xff] }
 0x543   :  { %v1206_v5 = vadd.f32 %v2544_v6, %v1185_v4 }
 0x545   :  { %v1222_v15 = vmax.f32 %v1206_v5, 0.0 }
 0x547   :  { %v1233_v17 = vpack.c.bf16 %v1222_v15, %v1221_v14 }
 0x548   :  { %v1161_v19 = vpop.f32.mrf.mxu1 }
 0x549   :  { %1516 = vmatmul.bf16.gmra.mxu0 %v1233_v17  ;;  %v1186_v21 = vadd.f32 %v1161_v19, %v1008_v20 }
 0x54b   :  { %v1207_v29 = vadd.f32 %v2544_v6, %v1186_v21 }
 0x54d   :  { %v1223_v32 = vmax.f32 %v1207_v29, 0.0 }
 0x550   :  { %v1163_v28 = vpop.f32.mrf.mxu1 }
 0x551   :  { %v1187_v30 = vadd.f32 %v1163_v28, %v1010_v25 }
 0x553   :  { %v1208_v31 = vadd.f32 %v2544_v6, %v1187_v30 }
 0x555   :  { %v1224_v9 = vmax.f32 %v1208_v31, 0.0 }
 0x557   :  { %v1234_v11 = vpack.c.bf16 %v1224_v9, %v1223_v32 }
 0x558   :  { %v1166_v10 = vpop.f32.mrf.mxu1 }
 0x559   :  { %1521 = vmatmul.bf16.gmra.mxu0 %v1234_v11  ;;  %v1188_v13 = vadd.f32 %v1166_v10, %v1013_v33 }
 0x55b   :  { %v1209_v38 = vadd.f32 %v2544_v6, %v1188_v13  ;;  %v2204_v13 = vld [vmem:[#allocation7 + $0x238] sm:$0xff] }
 0x55d   :  { %v1225_v42 = vmax.f32 %v1209_v38, 0.0  ;;  %v2201_v38 = vld [vmem:[#allocation7 + $0x220] sm:$0xff] }
 0x560   :  { %v1168_v37 = vpop.f32.mrf.mxu1 }
 0x561   :  { %v1189_v39 = vadd.f32 %v1168_v37, %v1015_v36  ;;  %v2203_v36 = vld [vmem:[#allocation7 + $0x230] sm:$0xff]  ;;  %v2202_v37 = vld [vmem:[#allocation7 + $0x228] sm:$0xff] }
 0x563   :  { %v1210_v41 = vadd.f32 %v2544_v6, %v1189_v39  ;;  %v2200_v39 = vld [vmem:[#allocation7 + $0x218] sm:$0xff] }
 0x565   :  { %v1226_v43 = vmax.f32 %v1210_v41, 0.0  ;;  %v2198_v41 = vld [vmem:[#allocation7 + $0x208] sm:$0xff] }
 0x567   :  { %v1235_v44 = vpack.c.bf16 %v1226_v43, %v1225_v42 }
 0x568   :  { %v1171_v27 = vpop.f32.mrf.mxu1 }
 0x569   :  { %1526 = vmatmul.bf16.gmra.mxu0 %v1235_v44  ;;  %v1190_v49 = vadd.f32 %v1171_v27, %v1018_v45 }
 0x56b   :  { %v1211_v54 = vadd.f32 %v2544_v6, %v1190_v49 }
 0x56d   :  { %v1227_v48 = vmax.f32 %v1211_v54, 0.0 }
 0x570   :  { %v1173_v53 = vpop.f32.mrf.mxu1 }
 0x571   :  { %v1191_v52 = vadd.f32 %v1173_v53, %v1020_v51 }
 0x573   :  { %v1212_v55 = vadd.f32 %v2544_v6, %v1191_v52  ;;  %v2581_v6 = vld [vmem:[#allocation2 + $0x8] sm:$0xff] }
 0x575   :  { %v1228_v18 = vmax.f32 %v1212_v55, 0.0 }
 0x577   :  { %v1236_v62 = vpack.c.bf16 %v1228_v18, %v1227_v48 }
 0x579   :  { %1286 = vmatpush.bf16.msra.mxu2 %v1236_v62  ;;  %1531 = vmatmul.bf16.gmra.mxu0 %v1236_v62 }
 0x57d   :  { %1287 = vmatpush.bf16.msra.mxu2 %v1235_v44 }
 0x581   :  { %1288 = vmatpush.bf16.msra.mxu2 %v1234_v11 }
 0x585   :  { %1289 = vmatpush.bf16.msra.mxu2 %v1233_v17 }
 0x589   :  { %1290 = vmatpush.bf16.msra.mxu2 %v2563_v58  ;;  %v2195_v58 = vld [vmem:[#allocation7 + $0x1f0] sm:$0xff] }
 0x58d   :  { %1291 = vmatpush.bf16.msra.mxu2 %v2558_v47  ;;  %v2590_v47 = vld [vmem:[#allocation2 + $0x20] sm:$0xff] }
 0x591   :  { %1292 = vmatpush.bf16.msra.mxu2 %v2553_v34  ;;  %v2593_v34 = vld [vmem:[#allocation2 + $0x28] sm:$0xff] }
 0x595   :  { %1293 = vmatpush.bf16.msra.mxu2 %v2548_v24  ;;  %v2196_v24 = vld [vmem:[#allocation7 + $0x1f8] sm:$0xff] }
 0x596   :  { %1391 = vmatpush.bf16.msrb.mxu3 %v2196_v24 }
 0x598   :  { %1294 = vmatmul.bf16.vlgmr.msra.gmra.mxu2 %v2578_v35 }
 0x599   :  { %1642 = vmatpush.bf16.msrb.mxu2 %v2204_v13 }
 0x59a   :  { %1392 = vmatpush.bf16.msrb.mxu3 %v2195_v58 }
 0x59d   :  { %1643 = vmatpush.bf16.msrb.mxu2 %v2203_v36 }
 0x59e   :  { %1393 = vmatpush.bf16.msrb.mxu3 %v2194_v59 }
 0x5a1   :  { %1644 = vmatpush.bf16.msrb.mxu2 %v2202_v37 }
 0x5a2   :  { %1394 = vmatpush.bf16.msrb.mxu3 %v2193_v60 }
 0x5a5   :  { %1645 = vmatpush.bf16.msrb.mxu2 %v2201_v38 }
 0x5a6   :  { %1395 = vmatpush.bf16.msrb.mxu3 %v2192_v61 }
 0x5a8   :  { %1299 = vmatmul.bf16.gmra.mxu2 %v2581_v6 }
 0x5a9   :  { %1646 = vmatpush.bf16.msrb.mxu2 %v2200_v39 }
 0x5aa   :  { %1396 = vmatpush.bf16.msrb.mxu3 %v2191_v0 }
 0x5ad   :  { %1647 = vmatpush.bf16.msrb.mxu2 %v2199_v40 }
 0x5ae   :  { %1397 = vmatpush.bf16.msrb.mxu3 %v2190_v1 }
 0x5b1   :  { %1648 = vmatpush.bf16.msrb.mxu2 %v2198_v41 }
 0x5b2   :  { %1398 = vmatpush.bf16.msrb.mxu3 %v2189_v2 }
 0x5b5   :  { %1649 = vmatpush.bf16.msrb.mxu2 %v2197_v22 }
 0x5b8   :  { %1304 = vmatmul.bf16.gmra.mxu2 %v2584_v56 }
 0x5c8   :  { %1309 = vmatmul.bf16.gmra.mxu2 %v2587_v57 }
 0x5d8   :  { %1314 = vmatmul.bf16.gmra.mxu2 %v2590_v47 }
 0x5e8   :  { %1319 = vmatmul.bf16.gmra.mxu2 %v2593_v34 }
 0x5f8   :  { %1324 = vmatmul.bf16.gmra.mxu2 %v2596_v63 }
 0x608   :  { %1329 = vmatmul.bf16.gmra.mxu2 %v2599_v3 }
 0x61b   :  { %v1295_v4 = vpop.f32.mrf.mxu2 }
 0x623   :  { %v1297_v5 = vpop.f32.mrf.mxu2 }
 0x624   :  { %v1335_v7 = vpack.c.bf16 %v1297_v5, %v1295_v4  ;;  %v2610_v5 = vld [vmem:[#allocation8 + $0x2] ss:$0 sm:$0xff] }
 0x626   :  { %1399 = vmatmul.bf16.vlgmr.msrb.gmra.mxu3 %v1335_v7 }
 0x62b   :  { %v1300_v14 = vpop.f32.mrf.mxu2 }
 0x633   :  { %v1302_v15 = vpop.f32.mrf.mxu2 }
 0x634   :  { %v1336_v16 = vpack.c.bf16 %v1302_v15, %v1300_v14 }
 0x636   :  { %1404 = vmatmul.bf16.gmra.mxu3 %v1336_v16 }
 0x63b   :  { %v1305_v17 = vpop.f32.mrf.mxu2 }
 0x643   :  { %v1307_v19 = vpop.f32.mrf.mxu2 }
 0x644   :  { %v1337_v20 = vpack.c.bf16 %v1307_v19, %v1305_v17 }
 0x646   :  { %1409 = vmatmul.bf16.gmra.mxu3 %v1337_v20 }
 0x64b   :  { %v1310_v21 = vpop.f32.mrf.mxu2 }
 0x653   :  { %v1312_v23 = vpop.f32.mrf.mxu2 }
 0x654   :  { %v1338_v25 = vpack.c.bf16 %v1312_v23, %v1310_v21 }
 0x656   :  { %1414 = vmatmul.bf16.gmra.mxu3 %v1338_v25 }
 0x65b   :  { %v1315_v26 = vpop.f32.mrf.mxu2 }
 0x663   :  { %v1317_v28 = vpop.f32.mrf.mxu2 }
 0x664   :  { %v1339_v29 = vpack.c.bf16 %v1317_v28, %v1315_v26 }
 0x666   :  { %1419 = vmatmul.bf16.gmra.mxu3 %v1339_v29 }
 0x66b   :  { %v1320_v30 = vpop.f32.mrf.mxu2 }
 0x673   :  { %v1322_v31 = vpop.f32.mrf.mxu2 }
 0x674   :  { %v1340_v32 = vpack.c.bf16 %v1322_v31, %v1320_v30 }
 0x676   :  { %1424 = vmatmul.bf16.gmra.mxu3 %v1340_v32 }
 0x67b   :  { %v1325_v9 = vpop.f32.mrf.mxu2 }
 0x683   :  { %v1327_v11 = vpop.f32.mrf.mxu2 }
 0x684   :  { %v1341_v8 = vpack.c.bf16 %v1327_v11, %v1325_v9 }
 0x686   :  { %1429 = vmatmul.bf16.gmra.mxu3 %v1341_v8 }
 0x68b   :  { %v1330_v10 = vpop.f32.mrf.mxu2 }
 0x693   :  { %v1332_v12 = vpop.f32.mrf.mxu2 }
 0x694   :  { %v1342_v33 = vpack.c.bf16 %v1332_v12, %v1330_v10 }
 0x696   :  { %1434 = vmatmul.bf16.gmra.mxu3 %v1342_v33  ;;  %1537 = vmatpush.bf16.msrb.mxu1 %v1342_v33 }
 0x69a   :  { %1538 = vmatpush.bf16.msrb.mxu1 %v1341_v8 }
 0x69e   :  { %1539 = vmatpush.bf16.msrb.mxu1 %v1340_v32 }
 0x6a2   :  { %1540 = vmatpush.bf16.msrb.mxu1 %v1339_v29 }
 0x6a6   :  { %1541 = vmatpush.bf16.msrb.mxu1 %v1338_v25 }
 0x6a9   :  { %v1400_v24 = vpop.f32.mrf.mxu3 }
 0x6aa   :  { %1542 = vmatpush.bf16.msrb.mxu1 %v1337_v20 }
 0x6ae   :  { %1543 = vmatpush.bf16.msrb.mxu1 %v1336_v16 }
 0x6b1   :  { %v1402_v59 = vpop.f32.mrf.mxu3 }
 0x6b2   :  { %1544 = vmatpush.bf16.msrb.mxu1 %v1335_v7 }
 0x6b5   :  { %1545 = vmatmul.bf16.vlgmr.msrb.gmra.mxu1 %v2578_v35 }
 0x6b9   :  { %v1405_v0 = vpop.f32.mrf.mxu3 }
 0x6c1   :  { %v1407_v2 = vpop.f32.mrf.mxu3 }
 0x6c5   :  { %1550 = vmatmul.bf16.gmra.mxu1 %v2581_v6 }
 0x6c9   :  { %v1410_v16 = vpop.f32.mrf.mxu3 }
 0x6d1   :  { %v1412_v26 = vpop.f32.mrf.mxu3 }
 0x6d5   :  { %1555 = vmatmul.bf16.gmra.mxu1 %v2584_v56 }
 0x6d9   :  { %v1415_v8 = vpop.f32.mrf.mxu3 }
 0x6e1   :  { %v1417_v38 = vpop.f32.mrf.mxu3 }
 0x6e5   :  { %1560 = vmatmul.bf16.gmra.mxu1 %v2587_v57 }
 0x6f5   :  { %1565 = vmatmul.bf16.gmra.mxu1 %v2590_v47 }
 0x705   :  { %1570 = vmatmul.bf16.gmra.mxu1 %v2593_v34  ;;  %v1497_v34 = vpop.f32.mrf.mxu0 }
 0x706   :  { %v1498_v4 = vadd.f32 %v1497_v34, %v1400_v24 }
 0x70d   :  { %v1499_v60 = vpop.f32.mrf.mxu0 }
 0x70e   :  { %v1500_v17 = vadd.f32 %v1499_v60, %v1402_v59 }
 0x715   :  { %1575 = vmatmul.bf16.gmra.mxu1 %v2596_v63  ;;  %v1502_v1 = vpop.f32.mrf.mxu0 }
 0x716   :  { %v1503_v25 = vadd.f32 %v1502_v1, %v1405_v0 }
 0x725   :  { %1580 = vmatmul.bf16.gmra.mxu1 %v2599_v3  ;;  %v1504_v3 = vpop.f32.mrf.mxu0 }
 0x726   :  { %v1505_v32 = vadd.f32 %v1504_v3, %v1407_v2 }
 0x72d   :  { %v1507_v19 = vpop.f32.mrf.mxu0 }
 0x72e   :  { %v1508_v33 = vadd.f32 %v1507_v19, %v1410_v16 }
 0x732   :  { %v1546_v42 = vpop.f32.mrf.mxu1 }
 0x735   :  { %v1509_v30 = vpop.f32.mrf.mxu0 }
 0x736   :  { %v1510_v40 = vadd.f32 %v1509_v30, %v1412_v26 }
 0x73a   :  { %v1548_v43 = vpop.f32.mrf.mxu1 }
 0x73b   :  { %v1586_v44 = vpack.c.bf16 %v1548_v43, %v1546_v42  ;;  %v1420_v43 = vpop.f32.mrf.mxu3 }
 0x73d   :  { %1650 = vmatmul.bf16.vlgmr.msrb.gmra.mxu2 %v1586_v44  ;;  %v1512_v12 = vpop.f32.mrf.mxu0 }
 0x73e   :  { %v1513_v44 = vadd.f32 %v1512_v12, %v1415_v8 }
 0x742   :  { %v1551_v27 = vpop.f32.mrf.mxu1 }
 0x745   :  { %v1514_v39 = vpop.f32.mrf.mxu0 }
 0x74a   :  { %v1553_v45 = vpop.f32.mrf.mxu1 }
 0x74b   :  { %v1587_v46 = vpack.c.bf16 %v1553_v45, %v1551_v27 }
 0x74d   :  { %1655 = vmatmul.bf16.gmra.mxu2 %v1587_v46  ;;  %v1517_v27 = vpop.f32.mrf.mxu0 }
 0x752   :  { %v1556_v49 = vpop.f32.mrf.mxu1 }
 0x75a   :  { %v1558_v50 = vpop.f32.mrf.mxu1 }
 0x75b   :  { %v1588_v51 = vpack.c.bf16 %v1558_v50, %v1556_v49  ;;  %v1515_v50 = vadd.f32 %v1514_v39, %v1417_v38 }
 0x75d   :  { %1660 = vmatmul.bf16.gmra.mxu2 %v1588_v51  ;;  %v1422_v51 = vpop.f32.mrf.mxu3 }
 0x762   :  { %v1561_v53 = vpop.f32.mrf.mxu1 }
 0x76a   :  { %v1563_v54 = vpop.f32.mrf.mxu1 }
 0x76b   :  { %v1589_v52 = vpack.c.bf16 %v1563_v54, %v1561_v53 }
 0x76d   :  { %1665 = vmatmul.bf16.gmra.mxu2 %v1589_v52  ;;  %v1519_v52 = vpop.f32.mrf.mxu0 }
 0x772   :  { %v1566_v55 = vpop.f32.mrf.mxu1 }
 0x77a   :  { %v1568_v48 = vpop.f32.mrf.mxu1 }
 0x77b   :  { %v1590_v18 = vpack.c.bf16 %v1568_v48, %v1566_v55  ;;  %v1518_v48 = vadd.f32 %v1517_v27, %v1420_v43 }
 0x77d   :  { %1670 = vmatmul.bf16.gmra.mxu2 %v1590_v18 }
 0x782   :  { %v1571_v62 = vpop.f32.mrf.mxu1 }
 0x78a   :  { %v1573_v35 = vpop.f32.mrf.mxu1 }
 0x78b   :  { %v1591_v6 = vpack.c.bf16 %v1573_v35, %v1571_v62  ;;  %v1425_v35 = vpop.f32.mrf.mxu3 }
 0x78d   :  { %1675 = vmatmul.bf16.gmra.mxu2 %v1591_v6 }
 0x792   :  { %v1576_v56 = vpop.f32.mrf.mxu1 }
 0x79a   :  { %v1578_v57 = vpop.f32.mrf.mxu1 }
 0x79b   :  { %v1592_v47 = vpack.c.bf16 %v1578_v57, %v1576_v56  ;;  %v1522_v56 = vpop.f32.mrf.mxu0  ;;  %v1520_v57 = vadd.f32 %v1519_v52, %v1422_v51 }
 0x79c   :  { %v1523_v60 = vadd.f32 %v1522_v56, %v1425_v35 }
 0x79d   :  { %1680 = vmatmul.bf16.gmra.mxu2 %v1592_v47 }
 0x7a2   :  { %v1581_v58 = vpop.f32.mrf.mxu1 }
 0x7a3   :  { %v1524_v59 = vpop.f32.mrf.mxu0 }
 0x7aa   :  { %v1583_v61 = vpop.f32.mrf.mxu1 }
 0x7ab   :  { %v1593_v63 = vpack.c.bf16 %v1583_v61, %v1581_v58  ;;  %v1427_v58 = vpop.f32.mrf.mxu3  ;;  %v1527_v3 = vpop.f32.mrf.mxu0 }
 0x7ac   :  { %v1525_v2 = vadd.f32 %v1524_v59, %v1427_v58 }
 0x7ad   :  { %1685 = vmatmul.bf16.gmra.mxu2 %v1593_v63 }
 0x7b3   :  { %v1430_v1 = vpop.f32.mrf.mxu3 }
 0x7bb   :  { %v1432_v16 = vpop.f32.mrf.mxu3 }
 0x7c0   :  { %v1651_v7 = vpop.f32.mrf.mxu2 }
 0x7c1   :  { %v1691_v14 = vadd.f32 %v1651_v7, %v1498_v4 }
 0x7c3   :  { %v1712_v15 = vadd.f32 %v2610_v5, %v1691_v14 }
 0x7c5   :  { %1728 = vst [vmem:[#allocation10] sm:$0xff] %v1712_v15  ;;  %v1528_v15 = vadd.f32 %v1527_v3, %v1430_v1 }
 0x7c8   :  { %v1653_v20 = vpop.f32.mrf.mxu2 }
 0x7c9   :  { %v1692_v21 = vadd.f32 %v1653_v20, %v1500_v17  ;;  %v1529_v20 = vpop.f32.mrf.mxu0 }
 0x7cb   :  { %v1713_v23 = vadd.f32 %v2610_v5, %v1692_v21 }
 0x7cd   :  { %1729 = vst [vmem:[#allocation10 + $0x8] sm:$0xff] %v1713_v23  ;;  %v1530_v23 = vadd.f32 %v1529_v20, %v1432_v16 }
 0x7d0   :  { %v1656_v28 = vpop.f32.mrf.mxu2 }
 0x7d1   :  { %v1693_v29 = vadd.f32 %v1656_v28, %v1503_v25  ;;  %v1435_v28 = vpop.f32.mrf.mxu3  ;;  %v1532_v30 = vpop.f32.mrf.mxu0 }
 0x7d3   :  { %v1714_v31 = vadd.f32 %v2610_v5, %v1693_v29 }
 0x7d5   :  { %1730 = vst [vmem:[#allocation10 + $0x10] sm:$0xff] %v1714_v31  ;;  %v1533_v31 = vadd.f32 %v1532_v30, %v1435_v28 }
 0x7d8   :  { %v1658_v9 = vpop.f32.mrf.mxu2 }
 0x7d9   :  { %v1694_v11 = vadd.f32 %v1658_v9, %v1505_v32  ;;  %v1437_v8 = vpop.f32.mrf.mxu3 }
 0x7db   :  { %v1715_v10 = vadd.f32 %v2610_v5, %v1694_v11 }
 0x7dd   :  { %1731 = vst [vmem:[#allocation10 + $0x18] sm:$0xff] %v1715_v10  ;;  %v1534_v10 = vpop.f32.mrf.mxu0 }
 0x7de   :  { %v1535_v12 = vadd.f32 %v1534_v10, %v1437_v8 }
 0x7e0   :  { %v1661_v13 = vpop.f32.mrf.mxu2 }
 0x7e1   :  { %v1695_v36 = vadd.f32 %v1661_v13, %v1508_v33 }
 0x7e3   :  { %v1716_v37 = vadd.f32 %v2610_v5, %v1695_v36 }
 0x7e5   :  { %1732 = vst [vmem:[#allocation10 + $0x20] sm:$0xff] %v1716_v37 }
 0x7e8   :  { %v1663_v41 = vpop.f32.mrf.mxu2 }
 0x7e9   :  { %v1696_v22 = vadd.f32 %v1663_v41, %v1510_v40 }
 0x7eb   :  { %v1717_v42 = vadd.f32 %v2610_v5, %v1696_v22 }
 0x7ed   :  { %1733 = vst [vmem:[#allocation10 + $0x28] sm:$0xff] %v1717_v42 }
 0x7f0   :  { %v1666_v45 = vpop.f32.mrf.mxu2 }
 0x7f1   :  { %v1697_v46 = vadd.f32 %v1666_v45, %v1513_v44 }
 0x7f3   :  { %v1718_v49 = vadd.f32 %v2610_v5, %v1697_v46 }
 0x7f5   :  { %1734 = vst [vmem:[#allocation10 + $0x30] sm:$0xff] %v1718_v49 }
 0x7f8   :  { %v1668_v53 = vpop.f32.mrf.mxu2 }
 0x7f9   :  { %v1698_v54 = vadd.f32 %v1668_v53, %v1515_v50 }
 0x7fb   :  { %v1719_v55 = vadd.f32 %v2610_v5, %v1698_v54 }
 0x7fd   :  { %1735 = vst [vmem:[#allocation10 + $0x38] sm:$0xff] %v1719_v55 }
 0x800   :  { %v1671_v18 = vpop.f32.mrf.mxu2 }
 0x801   :  { %v1699_v62 = vadd.f32 %v1671_v18, %v1518_v48 }
 0x803   :  { %v1720_v6 = vadd.f32 %v2610_v5, %v1699_v62 }
 0x805   :  { %1736 = vst [vmem:[#allocation10 + $0x40] sm:$0xff] %v1720_v6 }
 0x808   :  { %v1673_v47 = vpop.f32.mrf.mxu2 }
 0x809   :  { %v1700_v24 = vadd.f32 %v1673_v47, %v1520_v57 }
 0x80b   :  { %v1721_v34 = vadd.f32 %v2610_v5, %v1700_v24 }
 0x80d   :  { %1737 = vst [vmem:[#allocation10 + $0x48] sm:$0xff] %v1721_v34 }
 0x810   :  { %v1676_v61 = vpop.f32.mrf.mxu2 }
 0x811   :  { %v1701_v63 = vadd.f32 %v1676_v61, %v1523_v60 }
 0x813   :  { %v1722_v0 = vadd.f32 %v2610_v5, %v1701_v63 }
 0x815   :  { %1738 = vst [vmem:[#allocation10 + $0x50] sm:$0xff] %v1722_v0 }
 0x818   :  { %v1678_v4 = vpop.f32.mrf.mxu2 }
 0x819   :  { %v1702_v7 = vadd.f32 %v1678_v4, %v1525_v2 }
 0x81b   :  { %v1723_v14 = vadd.f32 %v2610_v5, %v1702_v7 }
 0x81d   :  { %1739 = vst [vmem:[#allocation10 + $0x58] sm:$0xff] %v1723_v14 }
 0x820   :  { %v1681_v17 = vpop.f32.mrf.mxu2 }
 0x821   :  { %v1703_v19 = vadd.f32 %v1681_v17, %v1528_v15 }
 0x823   :  { %v1724_v21 = vadd.f32 %v2610_v5, %v1703_v19 }
 0x825   :  { %1740 = vst [vmem:[#allocation10 + $0x60] sm:$0xff] %v1724_v21 }
 0x828   :  { %v1683_v25 = vpop.f32.mrf.mxu2 }
 0x829   :  { %v1704_v26 = vadd.f32 %v1683_v25, %v1530_v23 }
 0x82b   :  { %v1725_v29 = vadd.f32 %v2610_v5, %v1704_v26 }
 0x82d   :  { %1741 = vst [vmem:[#allocation10 + $0x68] sm:$0xff] %v1725_v29 }
 0x830   :  { %v1686_v32 = vpop.f32.mrf.mxu2 }
 0x831   :  { %v1705_v9 = vadd.f32 %v1686_v32, %v1533_v31 }
 0x833   :  { %v1726_v11 = vadd.f32 %v2610_v5, %v1705_v9 }
 0x835   :  { %1742 = vst [vmem:[#allocation10 + $0x70] sm:$0xff] %v1726_v11 }
 0x838   :  { %v1688_v33 = vpop.f32.mrf.mxu2 }
 0x839   :  { %v1706_v13 = vadd.f32 %v1688_v33, %v1535_v12 }
 0x83b   :  { %v1727_v36 = vadd.f32 %v2610_v5, %v1706_v13 }
 0x83d   :  { %1743 = vst [vmem:[#allocation10 + $0x78] sm:$0xff] %v1727_v36 }
 0x83e   :  { %1756 = dma.vmem_to_hbm [thread:$0]  %s1749_s3, 2048, %s1751_s13, [#allocation4], %s2388_s14, %s2388_s14, %s2389_s15  }
 0x83f   :  { %2377 = dma.done.wait [#allocation4], 2048  }
 0x840   :  { %2378 = vsyncadd [#allocation4], 4294965248 }
 0x841   :  { %1761 = vsyncpa [#allocation3], 1 }
 0x842   :  { %1762 = vsyncpa [#allocation6], 1 }
 0x843   :  { %1763 = vsyncpa [#allocation9], 1 }
 0x844   :  { %1764 = vsyncpa [#allocation4], 1 }

</bundles_post_ra>
